<compile_context>
chip_gen: v7x
topology: tpu7x:2x2x1
jax: 0.10.0
libtpu: 0.0.40
codegen_flags: <defaults>
</compile_context>

<pallas_src>
import jax
import jax.numpy as jnp
import numpy as np
from jax.experimental import pallas as pl
from jax.experimental.pallas import tpu as pltpu

LANE = 128
HID1, HID2, HID3, HID4 = 256, 1024, 512, 216


def _round_up(x, m):
    return (x + m - 1) // m * m


# --------------------------------------------------------------------------
# Kernel
# --------------------------------------------------------------------------
def fourier_model_kernel(xrep_ref, krow_ref,
                         w12_ref, b12_ref,
                         w3_ref, b3_ref,
                         w4_ref, b4_ref,
                         w5_ref, b5_ref,
                         out_ref):
    # --- KAN layer with fc2 folded in (no nonlinearity between them) ------
    arg = xrep_ref[...] * krow_ref[...]                          # (Bb, KDp)
    cs = jnp.concatenate([jnp.cos(arg), jnp.sin(arg)], axis=1)   # (Bb, 2*KDp)
    # NOTE: at large batch, the cos/sin could be replaced by the
    # angle-addition recurrence to offload the VPU; at B=8 it is noise.
    cs = cs.astype(jnp.bfloat16)
    h = jnp.dot(cs, w12_ref[...],
                preferred_element_type=jnp.float32) + b12_ref[...]   # (Bb, 1024)
    h = jnp.maximum(h, 0.0)

    # --- fc3 / fc4 / fc5 ---------------------------------------------------
    h = jnp.dot(h.astype(jnp.bfloat16), w3_ref[...],
                preferred_element_type=jnp.float32) + b3_ref[...]    # (Bb, 512)
    h = jnp.maximum(h, 0.0)
    h = jnp.dot(h.astype(jnp.bfloat16), w4_ref[...],
                preferred_element_type=jnp.float32) + b4_ref[...]    # (Bb, 256) [216 padded]
    h = jnp.maximum(h, 0.0)
    out = jnp.dot(h.astype(jnp.bfloat16), w5_ref[...],
                  preferred_element_type=jnp.float32) + b5_ref[...]  # (Bb, 128) [out_dim padded]
    out_ref[...] = out.astype(out_ref.dtype)


# --------------------------------------------------------------------------
# Parameters (PyTorch-equivalent f32 params) + kernel-side prep (fold/pad/cast)
# --------------------------------------------------------------------------
def make_params(in_dim, out_dim, gridsize=16, key=jax.random.PRNGKey(42)):
    """Deterministic synthetic parameters mirroring the PyTorch shapes."""
    ks = jax.random.split(key, 10)
    G = gridsize
    # fouriercoeffs: (2, 256, in_dim, G) / (sqrt(in_dim) * sqrt(G))
    fc = jax.random.normal(ks[0], (2, HID1, in_dim, G), jnp.float32) / (
        np.sqrt(in_dim) * np.sqrt(G))
    wc = fc[0].reshape(HID1, in_dim * G).T      # (in_dim*G, 256)
    ws = fc[1].reshape(HID1, in_dim * G).T      # (in_dim*G, 256)
    b1 = jnp.zeros((1, HID1), jnp.float32)

    def linear(k, fan_in, fan_out):
        kw, kb = jax.random.split(k)
        bound = 1.0 / np.sqrt(fan_in)
        w = jax.random.uniform(kw, (fan_in, fan_out), jnp.float32, -bound, bound)
        b = jax.random.uniform(kb, (1, fan_out), jnp.float32, -bound, bound)
        return w, b

    w2, b2 = linear(ks[1], HID1, HID2)
    w3, b3 = linear(ks[2], HID2, HID3)
    w4, b4 = linear(ks[3], HID3, HID4)
    w5, b5 = linear(ks[4], HID4, out_dim)
    return dict(wc=wc, ws=ws, b1=b1, w2=w2, b2=b2, w3=w3, b3=b3,
                w4=w4, b4=b4, w5=w5, b5=b5, gridsize=G)


def prepare_kernel_params(params, in_dim, out_dim):
    """Fold fc2 into the KAN matmul, pad narrow dims to 128 multiples, cast bf16."""
    G = params["gridsize"]
    KD = in_dim * G
    KDp = _round_up(KD, LANE)

    # Pad KAN weights along the contraction dim (zero rows -> no contribution).
    wc_p = jnp.zeros((KDp, HID1), jnp.float32).at[:KD].set(params["wc"])
    ws_p = jnp.zeros((KDp, HID1), jnp.float32).at[:KD].set(params["ws"])
    w1 = jnp.concatenate([wc_p, ws_p], axis=0)                 # (2*KDp, 256)

    # Fold fc2 (computed in f32).
    w12 = w1 @ params["w2"]                                    # (2*KDp, 1024)
    b12 = params["b1"] @ params["w2"] + params["b2"]           # (1, 1024)

    # Pad 216-wide hidden -> 256 and out_dim -> 128 (lane-dense stores).
    H4p = _round_up(HID4, LANE)        # 256
    ODp = _round_up(out_dim, LANE)     # 128
    w4p = jnp.zeros((HID3, H4p), jnp.float32).at[:, :HID4].set(params["w4"])
    b4p = jnp.zeros((1, H4p), jnp.float32).at[:, :HID4].set(params["b4"])
    w5p = jnp.zeros((H4p, ODp), jnp.float32).at[:HID4, :out_dim].set(params["w5"])
    b5p = jnp.zeros((1, ODp), jnp.float32).at[:, :out_dim].set(params["b5"])

    # k row: k[0, i*G + g] = g + 1, zero in padding (its weight rows are zero).
    k_row = jnp.zeros((1, KDp), jnp.float32).at[:, :KD].set(
        jnp.tile(jnp.arange(1, G + 1, dtype=jnp.float32), in_dim)[None, :])

    bf = jnp.bfloat16
    return dict(
        k_row=k_row,
        w12=w12.astype(bf), b12=b12,
        w3=params["w3"].astype(bf), b3=params["b3"],
        w4=w4p.astype(bf), b4=b4p,
        w5=w5p.astype(bf), b5=b5p,
        G=G, KD=KD, KDp=KDp, ODp=ODp, out_dim=out_dim)


# --------------------------------------------------------------------------
# Wrapper
# --------------------------------------------------------------------------
def fourier_model_forward(x, kp, *, block_b=256):
    """x: (B, in_dim) float32 -> (B, out_dim) float32."""
    B, in_dim = x.shape
    G, KD, KDp, ODp = kp["G"], kp["KD"], kp["KDp"], kp["ODp"]
    out_dim = kp["out_dim"]

    # Layout glue: x_rep[b, i*G+g] = x[b, i], zero-padded to KDp lanes.
    x_rep = jnp.repeat(x, G, axis=1)                               # (B, KD)
    if KDp > KD:
        x_rep = jnp.pad(x_rep, ((0, 0), (0, KDp - KD)))

    # Batch tiling: resident weights, parallel batch axis (trivial at B=8).
    blk_b = min(block_b, _round_up(B, 8))
    Bp = _round_up(B, blk_b)
    if Bp > B:
        x_rep = jnp.pad(x_rep, ((0, Bp - B), (0, 0)))
    grid = (Bp // blk_b,)

    def resident(arr):
        # Whole-array block with a constant index_map: stays in VMEM across grid.
        return pl.BlockSpec(arr.shape, lambda i: (0,) * arr.ndim)

    weights = (kp["w12"], kp["b12"], kp["w3"], kp["b3"],
               kp["w4"], kp["b4"], kp["w5"], kp["b5"])

    in_specs = ([pl.BlockSpec((blk_b, KDp), lambda i: (i, 0)),   # x_rep (batch-tiled)
                 resident(kp["k_row"])]
                + [resident(w) for w in weights])
    out_specs = pl.BlockSpec((blk_b, ODp), lambda i: (i, 0))

    weight_bytes = sum(int(np.prod(w.shape)) * w.dtype.itemsize for w in weights)
    cost = pl.CostEstimate(
        flops=2 * Bp * (2 * KDp * HID2 + HID2 * HID3 + HID3 * 256 + 256 * ODp),
        transcendentals=2 * Bp * KDp,
        bytes_accessed=weight_bytes + 4 * Bp * (KDp + ODp),
    )

    out = pl.pallas_call(
        fourier_model_kernel,
        out_shape=jax.ShapeDtypeStruct((Bp, ODp), jnp.float32),
        grid=grid,
        in_specs=in_specs,
        out_specs=out_specs,
        compiler_params=pltpu.CompilerParams(
            dimension_semantics=("parallel",),
            vmem_limit_bytes=32 << 20),
        cost_estimate=cost,
    )(x_rep, kp["k_row"], *weights)

    return out[:B, :out_dim]


# --------------------------------------------------------------------------
# Pure-JAX f32 reference replicating the PyTorch forward
# --------------------------------------------------------------------------
def fourier_model_ref(x, params):
    G = params["gridsize"]
    B, in_dim = x.shape
    k = jnp.arange(1, G + 1, dtype=jnp.float32)                   # (G,)
    xk = x[:, :, None] * k[None, None, :]                         # (B, in_dim, G)
    c = jnp.cos(xk).reshape(B, in_dim * G)
    s = jnp.sin(xk).reshape(B, in_dim * G)
    y = c @ params["wc"] + s @ params["ws"] + params["b1"]
    h = jax.nn.relu(y @ params["w2"] + params["b2"])
    h = jax.nn.relu(h @ params["w3"] + params["b3"])
    h = jax.nn.relu(h @ params["w4"] + params["b4"])
    return h @ params["w5"] + params["b5"]


if __name__ == "__main__":
    B, in_dim, out_dim = 8, 8, 4
    key = jax.random.PRNGKey(0)
    x = jax.random.normal(key, (B, in_dim), jnp.float32)

    params = make_params(in_dim, out_dim)
    kparams = prepare_kernel_params(params, in_dim, out_dim)

    out = fourier_model_forward(x, kparams)
    out = jax.block_until_ready(out)

    ref = fourier_model_ref(x, params)
    # bf16 MXU operands (f32 accumulation) -> tolerance relaxed vs pure f32.
    np.testing.assert_allclose(np.asarray(out), np.asarray(ref),
                               rtol=2e-2, atol=2e-2)
    print("KERNEL_OK")
</pallas_src>

<mosaic_0001>
module attributes {stable_mosaic.version = 11 : i64} {
  func.func @fourier_model_kernel(%arg0: i32, %arg1: memref<8x128xf32, #tpu.memory_space<vmem>>, %arg2: memref<1x128xf32, #tpu.memory_space<vmem>>, %arg3: memref<256x1024xbf16, #tpu.memory_space<vmem>>, %arg4: memref<1x1024xf32, #tpu.memory_space<vmem>>, %arg5: memref<1024x512xbf16, #tpu.memory_space<vmem>>, %arg6: memref<1x512xf32, #tpu.memory_space<vmem>>, %arg7: memref<512x256xbf16, #tpu.memory_space<vmem>>, %arg8: memref<1x256xf32, #tpu.memory_space<vmem>>, %arg9: memref<256x128xbf16, #tpu.memory_space<vmem>>, %arg10: memref<1x128xf32, #tpu.memory_space<vmem>>, %arg11: memref<8x128xf32, #tpu.memory_space<vmem>>) attributes {dimension_semantics = [#tpu.dimension_semantics<parallel>], iteration_bounds = array<i64: 1>, scalar_prefetch = 0 : i64, scratch_operands = 0 : i64, tpu.core_type = #tpu.core_type<tc>, window_params = [{transform_indices = @transform_0, window_bounds = array<i64: 8, 128>}, {pipeline_mode = #tpu.pipeline_mode<synchronous>, transform_indices = @transform_1, window_bounds = array<i64: 1, 128>}, {pipeline_mode = #tpu.pipeline_mode<synchronous>, transform_indices = @transform_2, window_bounds = array<i64: 256, 1024>}, {pipeline_mode = #tpu.pipeline_mode<synchronous>, transform_indices = @transform_3, window_bounds = array<i64: 1, 1024>}, {pipeline_mode = #tpu.pipeline_mode<synchronous>, transform_indices = @transform_4, window_bounds = array<i64: 1024, 512>}, {pipeline_mode = #tpu.pipeline_mode<synchronous>, transform_indices = @transform_5, window_bounds = array<i64: 1, 512>}, {pipeline_mode = #tpu.pipeline_mode<synchronous>, transform_indices = @transform_6, window_bounds = array<i64: 512, 256>}, {pipeline_mode = #tpu.pipeline_mode<synchronous>, transform_indices = @transform_7, window_bounds = array<i64: 1, 256>}, {pipeline_mode = #tpu.pipeline_mode<synchronous>, transform_indices = @transform_8, window_bounds = array<i64: 256, 128>}, {pipeline_mode = #tpu.pipeline_mode<synchronous>, transform_indices = @transform_9, window_bounds = array<i64: 1, 128>}, {transform_indices = @transform_10, window_bounds = array<i64: 8, 128>}]} {
    %c0 = arith.constant 0 : index
    %c0_0 = arith.constant 0 : index
    %0 = vector.load %arg1[%c0, %c0_0] : memref<8x128xf32, #tpu.memory_space<vmem>>, vector<8x128xf32>
    %c0_1 = arith.constant 0 : index
    %c0_2 = arith.constant 0 : index
    %1 = vector.load %arg2[%c0_1, %c0_2] : memref<1x128xf32, #tpu.memory_space<vmem>>, vector<1x128xf32>
    %2 = vector.broadcast %1 : vector<1x128xf32> to vector<8x128xf32>
    %3 = arith.mulf %0, %2 : vector<8x128xf32>
    %4 = math.cos %3 : vector<8x128xf32>
    %5 = math.sin %3 : vector<8x128xf32>
    %6 = tpu.concatenate %4, %5 in 1 : vector<8x128xf32>, vector<8x128xf32> -> vector<8x256xf32>
    %7 = arith.truncf %6 : vector<8x256xf32> to vector<8x256xbf16>
    %c0_3 = arith.constant 0 : index
    %c0_4 = arith.constant 0 : index
    %8 = vector.load %arg3[%c0_3, %c0_4] : memref<256x1024xbf16, #tpu.memory_space<vmem>>, vector<256x1024xbf16>
    %cst = arith.constant dense<0.000000e+00> : vector<8x1024xf32>
    %9 = tpu.matmul %7, %8, %cst {dimension_numbers = #tpu.dot_dimension_numbers<[1], [0], [0], [1], [0, 0, 1, 1], [], []>} : vector<8x256xbf16>, vector<256x1024xbf16>, vector<8x1024xf32> -> vector<8x1024xf32>
    %c0_5 = arith.constant 0 : index
    %c0_6 = arith.constant 0 : index
    %10 = vector.load %arg4[%c0_5, %c0_6] : memref<1x1024xf32, #tpu.memory_space<vmem>>, vector<1x1024xf32>
    %11 = vector.broadcast %10 : vector<1x1024xf32> to vector<8x1024xf32>
    %12 = arith.addf %9, %11 : vector<8x1024xf32>
    %cst_7 = arith.constant 0.000000e+00 : f32
    %13 = vector.broadcast %cst_7 : f32 to vector<8x1024xf32>
    %14 = arith.maximumf %12, %13 : vector<8x1024xf32>
    %15 = arith.truncf %14 : vector<8x1024xf32> to vector<8x1024xbf16>
    %c0_8 = arith.constant 0 : index
    %c0_9 = arith.constant 0 : index
    %16 = vector.load %arg5[%c0_8, %c0_9] : memref<1024x512xbf16, #tpu.memory_space<vmem>>, vector<1024x512xbf16>
    %cst_10 = arith.constant dense<0.000000e+00> : vector<8x512xf32>
    %17 = tpu.matmul %15, %16, %cst_10 {dimension_numbers = #tpu.dot_dimension_numbers<[1], [0], [0], [1], [0, 0, 1, 1], [], []>} : vector<8x1024xbf16>, vector<1024x512xbf16>, vector<8x512xf32> -> vector<8x512xf32>
    %c0_11 = arith.constant 0 : index
    %c0_12 = arith.constant 0 : index
    %18 = vector.load %arg6[%c0_11, %c0_12] : memref<1x512xf32, #tpu.memory_space<vmem>>, vector<1x512xf32>
    %19 = vector.broadcast %18 : vector<1x512xf32> to vector<8x512xf32>
    %20 = arith.addf %17, %19 : vector<8x512xf32>
    %cst_13 = arith.constant 0.000000e+00 : f32
    %21 = vector.broadcast %cst_13 : f32 to vector<8x512xf32>
    %22 = arith.maximumf %20, %21 : vector<8x512xf32>
    %23 = arith.truncf %22 : vector<8x512xf32> to vector<8x512xbf16>
    %c0_14 = arith.constant 0 : index
    %c0_15 = arith.constant 0 : index
    %24 = vector.load %arg7[%c0_14, %c0_15] : memref<512x256xbf16, #tpu.memory_space<vmem>>, vector<512x256xbf16>
    %cst_16 = arith.constant dense<0.000000e+00> : vector<8x256xf32>
    %25 = tpu.matmul %23, %24, %cst_16 {dimension_numbers = #tpu.dot_dimension_numbers<[1], [0], [0], [1], [0, 0, 1, 1], [], []>} : vector<8x512xbf16>, vector<512x256xbf16>, vector<8x256xf32> -> vector<8x256xf32>
    %c0_17 = arith.constant 0 : index
    %c0_18 = arith.constant 0 : index
    %26 = vector.load %arg8[%c0_17, %c0_18] : memref<1x256xf32, #tpu.memory_space<vmem>>, vector<1x256xf32>
    %27 = vector.broadcast %26 : vector<1x256xf32> to vector<8x256xf32>
    %28 = arith.addf %25, %27 : vector<8x256xf32>
    %cst_19 = arith.constant 0.000000e+00 : f32
    %29 = vector.broadcast %cst_19 : f32 to vector<8x256xf32>
    %30 = arith.maximumf %28, %29 : vector<8x256xf32>
    %31 = arith.truncf %30 : vector<8x256xf32> to vector<8x256xbf16>
    %c0_20 = arith.constant 0 : index
    %c0_21 = arith.constant 0 : index
    %32 = vector.load %arg9[%c0_20, %c0_21] : memref<256x128xbf16, #tpu.memory_space<vmem>>, vector<256x128xbf16>
    %cst_22 = arith.constant dense<0.000000e+00> : vector<8x128xf32>
    %33 = tpu.matmul %31, %32, %cst_22 {dimension_numbers = #tpu.dot_dimension_numbers<[1], [0], [0], [1], [0, 0, 1, 1], [], []>} : vector<8x256xbf16>, vector<256x128xbf16>, vector<8x128xf32> -> vector<8x128xf32>
    %c0_23 = arith.constant 0 : index
    %c0_24 = arith.constant 0 : index
    %34 = vector.load %arg10[%c0_23, %c0_24] : memref<1x128xf32, #tpu.memory_space<vmem>>, vector<1x128xf32>
    %35 = vector.broadcast %34 : vector<1x128xf32> to vector<8x128xf32>
    %36 = arith.addf %33, %35 : vector<8x128xf32>
    %c0_25 = arith.constant 0 : index
    %c0_26 = arith.constant 0 : index
    %37 = vector.load %arg11[%c0_25, %c0_26] : memref<8x128xf32, #tpu.memory_space<vmem>>, vector<8x128xf32>
    tpu.vector_store %arg11[%c0_25, %c0_26], %36 {strides = array<i32>} : memref<8x128xf32, #tpu.memory_space<vmem>>, vector<8x128xf32>,
    return
  }
  func.func @transform_0(%arg0: i32) -> (i32, i32) {
    %c0_i32 = arith.constant 0 : i32
    %c0_i32_0 = arith.constant 0 : i32
    return %arg0, %c0_i32 : i32, i32
  }
  func.func @transform_1(%arg0: i32) -> (i32, i32) {
    %c0_i32 = arith.constant 0 : i32
    %c0_i32_0 = arith.constant 0 : i32
    %c0_i32_1 = arith.constant 0 : i32
    return %c0_i32, %c0_i32_0 : i32, i32
  }
  func.func @transform_2(%arg0: i32) -> (i32, i32) {
    %c0_i32 = arith.constant 0 : i32
    %c0_i32_0 = arith.constant 0 : i32
    %c0_i32_1 = arith.constant 0 : i32
    return %c0_i32, %c0_i32_0 : i32, i32
  }
  func.func @transform_3(%arg0: i32) -> (i32, i32) {
    %c0_i32 = arith.constant 0 : i32
    %c0_i32_0 = arith.constant 0 : i32
    %c0_i32_1 = arith.constant 0 : i32
    return %c0_i32, %c0_i32_0 : i32, i32
  }
  func.func @transform_4(%arg0: i32) -> (i32, i32) {
    %c0_i32 = arith.constant 0 : i32
    %c0_i32_0 = arith.constant 0 : i32
    %c0_i32_1 = arith.constant 0 : i32
    return %c0_i32, %c0_i32_0 : i32, i32
  }
  func.func @transform_5(%arg0: i32) -> (i32, i32) {
    %c0_i32 = arith.constant 0 : i32
    %c0_i32_0 = arith.constant 0 : i32
    %c0_i32_1 = arith.constant 0 : i32
    return %c0_i32, %c0_i32_0 : i32, i32
  }
  func.func @transform_6(%arg0: i32) -> (i32, i32) {
    %c0_i32 = arith.constant 0 : i32
    %c0_i32_0 = arith.constant 0 : i32
    %c0_i32_1 = arith.constant 0 : i32
    return %c0_i32, %c0_i32_0 : i32, i32
  }
  func.func @transform_7(%arg0: i32) -> (i32, i32) {
    %c0_i32 = arith.constant 0 : i32
    %c0_i32_0 = arith.constant 0 : i32
    %c0_i32_1 = arith.constant 0 : i32
    return %c0_i32, %c0_i32_0 : i32, i32
  }
  func.func @transform_8(%arg0: i32) -> (i32, i32) {
    %c0_i32 = arith.constant 0 : i32
    %c0_i32_0 = arith.constant 0 : i32
    %c0_i32_1 = arith.constant 0 : i32
    return %c0_i32, %c0_i32_0 : i32, i32
  }
  func.func @transform_9(%arg0: i32) -> (i32, i32) {
    %c0_i32 = arith.constant 0 : i32
    %c0_i32_0 = arith.constant 0 : i32
    %c0_i32_1 = arith.constant 0 : i32
    return %c0_i32, %c0_i32_0 : i32, i32
  }
  func.func @transform_10(%arg0: i32) -> (i32, i32) {
    %c0_i32 = arith.constant 0 : i32
    %c0_i32_0 = arith.constant 0 : i32
    return %arg0, %c0_i32 : i32, i32
  }
}

</mosaic_0001>

<bundles_post_ra>
// kernel: tpu_custom_call.1
= control target key start
LH: loop header
LB: loop body
LE: loop exit
PB: predicated region body
PF: predicated region fallthrough
CT: control target
= control target key end

     0   :  { %15 = vsyncpa [#allocation3], 0  ;;  %s5381_s0 = inlined_call_operand.hbm [shape: f32[8,128], index: 0, kind: input, shape index: {}]   ;;  %s5382_s1 = inlined_call_operand.vmem [shape: f32[1,128], index: 1, kind: input, shape index: {}]   ;;  %s5383_s2 = inlined_call_operand.hbm [shape: bf16[256,1024], index: 2, kind: input, shape index: {}]   ;;  %s5384_s3 = inlined_call_operand.vmem [shape: f32[1,1024], index: 3, kind: input, shape index: {}]   ;;  %s5385_s4 = inlined_call_operand.hbm [shape: bf16[1024,512], index: 4, kind: input, shape index: {}]   ;;  %s5386_s5 = inlined_call_operand.vmem [shape: f32[1,512], index: 5, kind: input, shape index: {}]   ;;  %s5387_s6 = inlined_call_operand.hbm [shape: bf16[512,256], index: 6, kind: input, shape index: {}]   ;;  %s5388_s7 = inlined_call_operand.vmem [shape: f32[1,256], index: 7, kind: input, shape index: {}]   ;;  %s5389_s8 = inlined_call_operand.hbm [shape: bf16[256,128], index: 8, kind: input, shape index: {}]   ;;  %s5390_s9 = inlined_call_operand.vmem [shape: f32[1,128], index: 9, kind: input, shape index: {}]   ;;  %s5391_s10 = inlined_call_operand.hbm [shape: f32[8,128], index: 10, kind: output, shape index: {}]  }
   0x1   :  { %16 = vsyncpa [#allocation6], 0 }
   0x2   :  { %17 = vsyncpa [#allocation9], 0 }
   0x3   :  { %18 = vsyncpa [#allocation4], 0  ;;  %s5074_s13 = smov [#allocation5]   ;;  %s4934_s17 = scalar_lea.hbm %s5383_s2, 16384 }
   0x4   :  { %s36_s14 = sshll.u32 %s5074_s13, 4  ;;  %p4935_p0 = scmp.ne.s32.totalorder %s5383_s2, %s4934_s17  ;;  %s37_s14 = int_to_ptr.vmem [resolvable:$true] %s36_s14 }
   0x5   :  { %p4938_p1 = scmp.lt.u32.totalorder %s4934_s17, %s5383_s2 }
   0x7   :  { %p4940_p2 = pnand %p4938_p1, %p4935_p0 }
   0x9   :  { %4943 = shalt.err (!%p4940_p2)
}
   0xa   :  { %s4944_s22 = scalar_lea.vmem %s37_s14, 16384  ;;  %p4949_p4 = scmp.lt.s32.totalorder %s37_s14, %s37_s14 }
   0xb   :  { %p4945_p3 = scmp.ne.s32.totalorder %s37_s14, %s4944_s22  ;;  %p4950_p5 = scmp.lt.s32.totalorder %s4944_s22, %s4944_s22 }
   0xd   :  { %p4951_p6 = por %p4950_p5, %p4949_p4 }
   0xf   :  { %p4952_p7 = pnand %p4951_p6, %p4945_p3 }
  0x11   :  { %4955 = shalt.err (!%p4952_p7)
}
  0x12   :  { %s5075_s23 = smov 512   ;;  %s5076_s24 = smov 32  }
  0x13   :  { %42 = dma.hbm_to_vmem [thread:$0]  %s5383_s2, 16384, %s37_s14, [#allocation6], %s5075_s23, %s5075_s23, %s5076_s24  }
  0x14   :  { %s5077_s27 = smov [#allocation8]   ;;  %s4956_s11 = scalar_lea.hbm %s5387_s6, 8192 }
  0x15   :  { %s64_s28 = sshll.u32 %s5077_s27, 4  ;;  %p4957_p8 = scmp.ne.s32.totalorder %s5387_s6, %s4956_s11  ;;  %s65_s28 = int_to_ptr.vmem [resolvable:$true] %s64_s28 }
  0x16   :  { %p4960_p9 = scmp.lt.u32.totalorder %s4956_s11, %s5387_s6 }
  0x18   :  { %p4962_p10 = pnand %p4960_p9, %p4957_p8 }
  0x1a   :  { %4965 = shalt.err (!%p4962_p10)
}
  0x1b   :  { %s4966_s17 = scalar_lea.vmem %s65_s28, 8192  ;;  %p4971_p12 = scmp.lt.s32.totalorder %s65_s28, %s65_s28 }
  0x1c   :  { %p4967_p11 = scmp.ne.s32.totalorder %s65_s28, %s4966_s17  ;;  %p4972_p13 = scmp.lt.s32.totalorder %s4966_s17, %s4966_s17 }
  0x1e   :  { %p4973_p0 = por %p4972_p13, %p4971_p12 }
  0x20   :  { %p4974_p1 = pnand %p4973_p0, %p4967_p11 }
  0x22   :  { %4977 = shalt.err (!%p4974_p1)
}
  0x23   :  { %s5078_s2 = smov 128   ;;  %s5079_s14 = smov 8  }
  0x24   :  { %70 = dma.hbm_to_vmem [thread:$0]  %s5387_s6, 8192, %s65_s28, [#allocation9], %s5078_s2, %s5078_s2, %s5079_s14  }
  0x25   :  { %s5080_s20 = smov [#allocation2]   ;;  %s5081_s22 = smov [#allocation7]  }
  0x26   :  { %s25_s21 = sshll.u32 %s5080_s20, 4  ;;  %s50_s23 = sshll.u32 %s5081_s22, 4  ;;  %s26_s21 = int_to_ptr.vmem [resolvable:$true] %s25_s21  ;;  %s5173_s23 = int_to_ptr.vmem [resolvable:$true] %s50_s23 }
  0x27   :  { %s4978_s26 = scalar_lea.hbm %s5381_s0, 128 }
  0x28   :  { %p4979_p2 = scmp.ne.s32.totalorder %s5381_s0, %s4978_s26  ;;  %p4982_p3 = scmp.lt.u32.totalorder %s4978_s26, %s5381_s0 }
  0x2a   :  { %p4984_p4 = pnand %p4982_p3, %p4979_p2 }
  0x2c   :  { %4987 = shalt.err (!%p4984_p4)
}
  0x2d   :  { %s4988_s6 = scalar_lea.vmem %s26_s21, 128  ;;  %p4993_p6 = scmp.lt.s32.totalorder %s26_s21, %s26_s21 }
  0x2e   :  { %p4989_p5 = scmp.ne.s32.totalorder %s26_s21, %s4988_s6  ;;  %p4994_p7 = scmp.lt.s32.totalorder %s4988_s6, %s4988_s6 }
  0x30   :  { %p4995_p8 = por %p4994_p7, %p4993_p6 }
  0x32   :  { %p4996_p9 = pnand %p4995_p8, %p4989_p5 }
  0x34   :  { %4999 = shalt.err (!%p4996_p9)
}
  0x35   :  { %28 = dma.hbm_to_vmem [thread:$0]  %s5381_s0, 128, %s26_s21, [#allocation3]  }
  0x36   :  { %s5000_s16 = scalar_lea.hbm %s5385_s4, 32768 }
  0x37   :  { %p5001_p10 = scmp.ne.s32.totalorder %s5385_s4, %s5000_s16  ;;  %p5004_p11 = scmp.lt.u32.totalorder %s5000_s16, %s5385_s4 }
  0x39   :  { %p5006_p12 = pnand %p5004_p11, %p5001_p10 }
  0x3b   :  { %5009 = shalt.err (!%p5006_p12)
}
  0x3c   :  { %s5010_s19 = scalar_lea.vmem %s5173_s23, 32768  ;;  %p5015_p0 = scmp.lt.s32.totalorder %s5173_s23, %s5173_s23 }
  0x3d   :  { %p5011_p13 = scmp.ne.s32.totalorder %s5173_s23, %s5010_s19  ;;  %p5016_p1 = scmp.lt.s32.totalorder %s5010_s19, %s5010_s19 }
  0x3f   :  { %p5017_p2 = por %p5016_p1, %p5015_p0 }
  0x41   :  { %p5018_p3 = pnand %p5017_p2, %p5011_p13 }
  0x43   :  { %5021 = shalt.err (!%p5018_p3)
}
  0x44   :  { %s5082_s0 = smov 256   ;;  %s5083_s20 = smov 16  }
  0x45   :  { %56 = dma.hbm_to_vmem [thread:$0]  %s5385_s4, 32768, %s5173_s23, [#allocation6], %s5082_s0, %s5082_s0, %s5083_s20  }
  0x46   :  { %s5084_s24 = smov [#allocation10]   ;;  %s5022_s29 = scalar_lea.hbm %s5389_s8, 2048 }
  0x47   :  { %s78_s25 = sshll.u32 %s5084_s24, 4  ;;  %p5023_p4 = scmp.ne.s32.totalorder %s5389_s8, %s5022_s29  ;;  %s79_s25 = int_to_ptr.vmem [resolvable:$true] %s78_s25 }
  0x48   :  { %p5026_p5 = scmp.lt.u32.totalorder %s5022_s29, %s5389_s8 }
  0x4a   :  { %p5028_p6 = pnand %p5026_p5, %p5023_p4 }
  0x4c   :  { %5031 = shalt.err (!%p5028_p6)
}
  0x4d   :  { %s5032_s12 = scalar_lea.vmem %s79_s25, 2048  ;;  %p5037_p8 = scmp.lt.s32.totalorder %s79_s25, %s79_s25 }
  0x4e   :  { %p5033_p7 = scmp.ne.s32.totalorder %s79_s25, %s5032_s12  ;;  %p5038_p9 = scmp.lt.s32.totalorder %s5032_s12, %s5032_s12 }
  0x50   :  { %p5039_p10 = por %p5038_p9, %p5037_p8 }
  0x52   :  { %p5040_p11 = pnand %p5039_p10, %p5033_p7 }
  0x54   :  { %5043 = shalt.err (!%p5040_p11)
}
  0x55   :  { %s5085_s4 = smov 64   ;;  %s5086_s23 = smov 4  }
  0x56   :  { %84 = dma.hbm_to_vmem [thread:$0]  %s5389_s8, 2048, %s79_s25, [#allocation9], %s5085_s4, %s5085_s4, %s5086_s23  }
  0x57   :  { %5066 = dma.done.wait [#allocation3], 128  }
  0x58   :  { %5067 = vsyncadd [#allocation3], 4294967168 }
  0x59   :  { %5068 = dma.done.wait [#allocation6], 49152  }
  0x5a   :  { %5069 = vsyncadd [#allocation6], 4294918144 }
  0x5b   :  { %5070 = dma.done.wait [#allocation9], 10240  }
  0x5c   :  { %5071 = vsyncadd [#allocation9], 4294957056  ;;  %v321_v0 = vld [vmem:[#allocation5] sm:$0xff]  ;;  %v103_v17 = vld [vmem:[#allocation2] sm:$0xff]  ;;  %v5087_v52 = vmov 683565275  }
  0x5d   :  { %v325_v1 = vld [vmem:[#allocation5 + $0x20] sm:$0xff]  ;;  %v3880_v18 = vld [vmem:[%s5382_s1] ss:$0 sm:$0xff]  ;;  %v5088_v54 = vmov 2475754826  }
  0x5e   :  { %v329_v2 = vld [vmem:[#allocation5 + $0x40] sm:$0xff]  ;;  %v3890_v3 = vcombine.high %v321_v0, %v325_v1  ;;  %v3889_v4 = vcombine.low %v321_v0, %v325_v1  ;;  %v5219_v20 = vmul.f32 %v3880_v18, %v103_v17  ;;  %v5089_v56 = vmov 2131351028  }
  0x5f   :  { %v333_v5 = vld [vmem:[#allocation5 + $0x60] sm:$0xff]  ;;  %v5090_v59 = vmov 2102212464   ;;  %v5091_v61 = vmov 920167782  }
  0x60   :  { %v3898_v6 = vcombine.high %v329_v2, %v333_v5  ;;  %v337_v7 = vld [vmem:[#allocation5 + $0x80] sm:$0xff]  ;;  %1131 = vmatprep.subr.bf16.mxu1 %v3890_v3  ;;  %v3897_v9 = vcombine.low %v329_v2, %v333_v5  ;;  %v115_v24 = vand.u32 2139095040, %v5219_v20  ;;  %v112_v25 = vand.u32 2147483647, %v5219_v20 }
  0x61   :  { %v341_v8 = vld [vmem:[#allocation5 + $0xa0] sm:$0xff]  ;;  %1132 = vmatpush1.bf16.msra.mxu1 %v3889_v4  ;;  %v5092_v5 = vmov 1326507024   ;;  %vm114_vm7 = vcmp.lt.s32.totalorder %v5219_v20, 0  ;;  %vm204_vm15 = vweird.f32 %v5219_v20 }
  0x62   :  { %1133 = vmatprep.subr.bf16.mxu1 %v3898_v6  ;;  %v3906_v10 = vcombine.high %v337_v7, %v341_v8  ;;  %v345_v11 = vld [vmem:[#allocation5 + $0xc0] sm:$0xff]  ;;  %v3905_v13 = vcombine.low %v337_v7, %v341_v8  ;;  %v116_v27 = vshrl.u32 %v115_v24, 23  ;;  %v119_v32 = vand.u32 8388607, %v112_v25 }
  0x63   :  { %v349_v12 = vld [vmem:[#allocation5 + $0xe0] sm:$0xff]  ;;  %vm113_vm8 = vcmp.le.f32.partialorder %v112_v25, 0.7853982  ;;  %v435_v25 = vld [vmem:[#allocation5 + $0x390] sm:$0xff] }
  0x64   :  { %v3914_v14 = vcombine.high %v345_v11, %v349_v12  ;;  %v353_v15 = vld [vmem:[#allocation5 + $0x100] sm:$0xff]  ;;  %v3913_v19 = vcombine.low %v345_v11, %v349_v12  ;;  %v3881_v31 = vadd.s32 4294967169, %v116_v27  ;;  %v120_v40 = vor.u32 8388608, %v119_v32  ;;  %v327_v11 = vld [vmem:[#allocation5 + $0x30] sm:$0xff] }
  0x65   :  { %1134 = vmatpush1.bf16.msra.mxu1 %v3897_v9  ;;  %v357_v16 = vld [vmem:[#allocation5 + $0x120] sm:$0xff] }
  0x66   :  { %1135 = vmatprep.subr.bf16.mxu1 %v3906_v10  ;;  %v3922_v21 = vcombine.high %v353_v15, %v357_v16  ;;  %v361_v22 = vld [vmem:[#allocation5 + $0x140] sm:$0xff]  ;;  %v3921_v26 = vcombine.low %v353_v15, %v357_v16  ;;  %v122_v36 = vadd.s32 1, %v3881_v31  ;;  %v5239_v63 = vshll.u32 %v120_v40, 8  ;;  %v323_v10 = vld [vmem:[#allocation5 + $0x10] sm:$0xff] }
  0x67   :  { %v365_v23 = vld [vmem:[#allocation5 + $0x160] sm:$0xff]  ;;  %v335_v31 = vld [vmem:[#allocation5 + $0x70] sm:$0xff] }
  0x68   :  { %v3930_v28 = vcombine.high %v361_v22, %v365_v23  ;;  %v369_v29 = vld [vmem:[#allocation5 + $0x180] sm:$0xff]  ;;  %v3929_v33 = vcombine.low %v361_v22, %v365_v23  ;;  %vm123_vm0 = vcmp.gt.s32.totalorder %v122_v36, 0 }
  0x69   :  { %1136 = vmatpush1.bf16.msra.mxu1 %v3905_v13  ;;  %v373_v30 = vld [vmem:[#allocation5 + $0x1a0] sm:$0xff]  ;;  %v124_v41 = vsel %vm123_vm0, %v122_v36, 0  ;;  %v339_v36 = vld [vmem:[#allocation5 + $0x90] sm:$0xff] }
  0x6a   :  { %1137 = vmatprep.subr.bf16.mxu1 %v3914_v14  ;;  %v377_v34 = vld [vmem:[#allocation5 + $0x1c0] sm:$0xff]  ;;  %v3938_v37 = vcombine.high %v369_v29, %v373_v30  ;;  %v3937_v42 = vcombine.low %v369_v29, %v373_v30  ;;  %v126_v46 = vand.u32 31, %v124_v41  ;;  %v125_v50 = vshrl.u32 %v124_v41, 5  ;;  %v331_v30 = vld [vmem:[#allocation5 + $0x50] sm:$0xff] }
  0x6b   :  { %v381_v35 = vld [vmem:[#allocation5 + $0x1e0] sm:$0xff]  ;;  %v3894_v14 = vcombine.high %v323_v10, %v327_v11 }
  0x6c   :  { %v5225_v38 = vld [vmem:[#allocation5 + $0x200] sm:$0xff]  ;;  %v3946_v43 = vcombine.high %v377_v34, %v381_v35  ;;  %v3945_v47 = vcombine.low %v377_v34, %v381_v35  ;;  %v127_v51 = vsub.s32 32, %v126_v46  ;;  %v129_v53 = vshll.u32 %v5087_v52, %v126_v46 }
  0x6d   :  { %1138 = vmatpush1.bf16.msra.mxu1 %v3913_v19  ;;  %v5227_v39 = vld [vmem:[#allocation5 + $0x220] sm:$0xff]  ;;  %v132_v55 = vshll.u32 %v5088_v54, %v126_v46  ;;  %v135_v57 = vshll.u32 %v5089_v56, %v126_v46  ;;  %v138_v60 = vshll.u32 %v5090_v59, %v126_v46  ;;  %v141_v62 = vshll.u32 %v5091_v61, %v126_v46  ;;  %v351_v46 = vld [vmem:[#allocation5 + $0xf0] sm:$0xff] }
  0x6e   :  { %1139 = vmatprep.subr.bf16.mxu1 %v3922_v21  ;;  %v5229_v44 = vld [vmem:[#allocation5 + $0x240] sm:$0xff]  ;;  %v3954_v48 = vcombine.high %v5225_v38, %v5227_v39  ;;  %v3953_v49 = vcombine.low %v5225_v38, %v5227_v39  ;;  %v128_v0 = vshrl.u32 %v5087_v52, %v127_v51  ;;  %v130_v1 = vshrl.u32 %v5088_v54, %v127_v51 }
  0x6f   :  { %v5231_v45 = vld [vmem:[#allocation5 + $0x260] sm:$0xff]  ;;  %v133_v2 = vshrl.u32 %v5089_v56, %v127_v51  ;;  %v136_v3 = vshrl.u32 %v5090_v59, %v127_v51  ;;  %v139_v4 = vshrl.u32 %v5091_v61, %v127_v51  ;;  %v142_v6 = vshrl.u32 %v5092_v5, %v127_v51  ;;  %1213 = vmatprep.subr.bf16.mxu0 %v3894_v14  ;;  %v355_v56 = vld [vmem:[#allocation5 + $0x110] sm:$0xff] }
  0x70   :  { %v3962_v58 = vcombine.high %v5229_v44, %v5231_v45  ;;  %vm144_vm1 = vcmp.lt.s32.totalorder %v125_v50, 1  ;;  %vm145_vm2 = vcmp.lt.s32.totalorder %v125_v50, 2  ;;  %v131_v7 = vor.u32 %v130_v1, %v129_v53  ;;  %v401_v15 = vld [vmem:[#allocation5 + $0x280] sm:$0xff]  ;;  %v367_v5 = vld [vmem:[#allocation5 + $0x170] sm:$0xff] }
  0x71   :  { %1140 = vmatpush1.bf16.msra.mxu1 %v3921_v26  ;;  %v134_v8 = vor.u32 %v133_v2, %v132_v55  ;;  %v137_v9 = vor.u32 %v136_v3, %v135_v57  ;;  %vm147_vm3 = vcmp.lt.s32.totalorder %v125_v50, 4  ;;  %v140_v12 = vor.u32 %v139_v4, %v138_v60  ;;  %v405_v16 = vld [vmem:[#allocation5 + $0x2a0] sm:$0xff]  ;;  %v359_v57 = vld [vmem:[#allocation5 + $0x130] sm:$0xff] }
  0x72   :  { %1141 = vmatprep.subr.bf16.mxu1 %v3930_v28  ;;  %v143_v13 = vor.u32 %v142_v6, %v141_v62  ;;  %vm146_vm4 = vcmp.lt.s32.totalorder %v125_v50, 3  ;;  %v148_v17 = vsel %vm144_vm1, %v128_v0, %v131_v7  ;;  %v3893_v26 = vcombine.low %v323_v10, %v327_v11  ;;  %v417_v55 = vld [vmem:[#allocation5 + $0x300] sm:$0xff]  ;;  %v363_v2 = vld [vmem:[#allocation5 + $0x150] sm:$0xff] }
  0x73   :  { %v149_v18 = vsel %vm147_vm3, %v137_v9, 2102212464  ;;  %v152_v19 = vsel %vm144_vm1, %v131_v7, %v134_v8  ;;  %v156_v21 = vsel %vm144_vm1, %v134_v8, %v137_v9  ;;  %v153_v23 = vsel %vm147_vm3, %v140_v12, 920167782  ;;  %v429_v0 = vld [vmem:[#allocation5 + $0x360] sm:$0xff] }
  0x74   :  { %v150_v22 = vsel %vm146_vm4, %v134_v8, %v149_v18  ;;  %v157_v24 = vsel %vm147_vm3, %v143_v13, 1326507024  ;;  %v3961_v27 = vcombine.low %v5229_v44, %v5231_v45  ;;  %v154_v28 = vsel %vm146_vm4, %v137_v9, %v153_v23  ;;  %1214 = vmatpush1.bf16.msra.mxu0 %v3893_v26  ;;  %v347_v45 = vld [vmem:[#allocation5 + $0xd0] sm:$0xff]  ;;  %v433_v9 = vld [vmem:[#allocation5 + $0x380] sm:$0xff] }
  0x75   :  { %1142 = vmatpush1.bf16.msra.mxu1 %v3929_v33  ;;  %v158_v29 = vsel %vm146_vm4, %v140_v12, %v157_v24  ;;  %v151_v32 = vsel %vm145_vm2, %v148_v17, %v150_v22  ;;  %v155_v33 = vsel %vm145_vm2, %v152_v19, %v154_v28  ;;  %v3902_v35 = vcombine.high %v331_v30, %v335_v31  ;;  %v437_v10 = vld [vmem:[#allocation5 + $0x3a0] sm:$0xff]  ;;  %v371_v12 = vld [vmem:[#allocation5 + $0x190] sm:$0xff] }
  0x76   :  { %1143 = vmatprep.subr.bf16.mxu1 %v3938_v37  ;;  %v159_v34 = vsel %vm145_vm2, %v156_v21, %v158_v29  ;;  %v343_v37 = vld [vmem:[#allocation5 + $0xb0] sm:$0xff]  ;;  %v5260_v40 = vmul.u32.u64.low %v5239_v63, %v155_v33  ;;  %v5261_v41 = vmul.u32.u64.high %v5239_v63, %v155_v33, %v5260_v40  ;;  %v3969_v51 = vcombine.low %v401_v15, %v405_v16  ;;  %v441_v19 = vld [vmem:[#allocation5 + $0x3c0] sm:$0xff] }
  0x77   :  { %v5256_v38 = vmul.u32.u64.low %v5239_v63, %v159_v34  ;;  %v5257_v39 = vmul.u32.u64.high %v5239_v63, %v159_v34, %v5256_v38  ;;  %1215 = vmatprep.subr.bf16.mxu0 %v3902_v35  ;;  %v3910_v44 = vcombine.high %v339_v36, %v343_v37  ;;  %v3909_v50 = vcombine.low %v339_v36, %v343_v37  ;;  %v445_v21 = vld [vmem:[#allocation5 + $0x3e0] sm:$0xff]  ;;  %v379_v23 = vld [vmem:[#allocation5 + $0x1d0] sm:$0xff] }
  0x78   :  { %v170_v52 = vadd.s32 1, %v5261_v41  ;;  %v3918_v53 = vcombine.high %v347_v45, %v351_v46  ;;  %v3917_v61 = vcombine.low %v347_v45, %v351_v46  ;;  %v3926_v1 = vcombine.high %v355_v56, %v359_v57  ;;  %v387_v34 = vld [vmem:[#allocation5 + $0x210] sm:$0xff] }
  0x79   :  { %1144 = vmatpush1.bf16.msra.mxu1 %v3937_v42  ;;  %v3970_v42 = vcombine.high %v401_v15, %v405_v16  ;;  %vm169_vm5 = vc.u32 %v5257_v39, %v5260_v40  ;;  %v3925_v7 = vcombine.low %v355_v56, %v359_v57  ;;  %v3934_v11 = vcombine.high %v363_v2, %v367_v5  ;;  %v375_v15 = vld [vmem:[#allocation5 + $0x1b0] sm:$0xff] }
  0x7a   :  { %1145 = vmatprep.subr.bf16.mxu1 %v3946_v43  ;;  %v3901_v43 = vcombine.low %v331_v30, %v335_v31  ;;  %v171_v59 = vsel %vm169_vm5, %v170_v52, %v5261_v41  ;;  %v3933_v17 = vcombine.low %v363_v2, %v367_v5  ;;  %v3942_v22 = vcombine.high %v371_v12, %v375_v15  ;;  %v5272_v31 = vld [vmem:[#allocation5 + $0x8] sm:$0xff]  ;;  %v391_v37 = vld [vmem:[#allocation5 + $0x230] sm:$0xff] }
  0x7b   :  { %v4002_v24 = vcombine.high %v433_v9, %v437_v10  ;;  %v3941_v29 = vcombine.low %v371_v12, %v375_v15  ;;  %v4001_v30 = vcombine.low %v433_v9, %v437_v10  ;;  %v4010_v35 = vcombine.high %v441_v19, %v445_v21  ;;  %v407_v57 = vld [vmem:[#allocation5 + $0x2b0] sm:$0xff] }
  0x7c   :  { %1216 = vmatpush1.bf16.msra.mxu0 %v3901_v43  ;;  %v3958_v43 = vcombine.high %v387_v34, %v391_v37  ;;  %v168_v45 = vadd.s32 %v5260_v40, %v5257_v39  ;;  %v3957_v52 = vcombine.low %v387_v34, %v391_v37  ;;  %v423_v5 = vld [vmem:[#allocation5 + $0x330] sm:$0xff] }
  0x7d   :  { %1146 = vmatpush1.bf16.msra.mxu1 %v3945_v47  ;;  %v409_v47 = vld [vmem:[#allocation5 + $0x2c0] sm:$0xff]  ;;  %1217 = vmatprep.subr.bf16.mxu0 %v3910_v44  ;;  %v395_v44 = vld [vmem:[#allocation5 + $0x250] sm:$0xff] }
  0x7e   :  { %1147 = vmatprep.subr.bf16.mxu1 %v3954_v48  ;;  %v413_v48 = vld [vmem:[#allocation5 + $0x2e0] sm:$0xff]  ;;  %v427_v12 = vld [vmem:[#allocation5 + $0x350] sm:$0xff] }
  0x7f   :  { %v3978_v54 = vcombine.high %v409_v47, %v413_v48  ;;  %v3977_v62 = vcombine.low %v409_v47, %v413_v48  ;;  %v399_v47 = vld [vmem:[#allocation5 + $0x270] sm:$0xff] }
  0x80   :  { %1218 = vmatpush1.bf16.msra.mxu0 %v3909_v50 }
  0x81   :  { %1148 = vmatpush1.bf16.msra.mxu1 %v3953_v49  ;;  %v167_v49 = vmul.u32 %v5239_v63, %v151_v32  ;;  %v425_v63 = vld [vmem:[#allocation5 + $0x340] sm:$0xff]  ;;  %1219 = vmatprep.subr.bf16.mxu0 %v3918_v53  ;;  %v5274_v32 = vld [vmem:[#allocation5 + $0x28] sm:$0xff]  ;;  %v3966_v53 = vcombine.high %v395_v44, %v399_v47 }
  0x82   :  { %1149 = vmatprep.subr.bf16.mxu1 %v3962_v58  ;;  %v421_v58 = vld [vmem:[#allocation5 + $0x320] sm:$0xff]  ;;  %v3994_v13 = vcombine.high %v425_v63, %v429_v0  ;;  %v3993_v18 = vcombine.low %v425_v63, %v429_v0  ;;  %v3892_v46 = vcombine.high %v5272_v31, %v5274_v32 }
  0x83   :  { %v172_v60 = vadd.s32 %v171_v59, %v167_v49  ;;  %v3986_v3 = vcombine.high %v417_v55, %v421_v58  ;;  %v3985_v8 = vcombine.low %v417_v55, %v421_v58  ;;  %v3965_v58 = vcombine.low %v395_v44, %v399_v47 }
  0x84   :  { %1220 = vmatpush1.bf16.msra.mxu0 %v3917_v61  ;;  %v415_v61 = vld [vmem:[#allocation5 + $0x2f0] sm:$0xff] }
  0x85   :  { %1150 = vmatpush1.bf16.msra.mxu1 %v3961_v27  ;;  %v173_v4 = vadd.s32 536870912, %v172_v60  ;;  %1221 = vmatprep.subr.bf16.mxu0 %v3926_v1  ;;  %v383_v27 = vld [vmem:[#allocation5 + $0x1f0] sm:$0xff] }
  0x86   :  { %1151 = vmatprep.subr.bf16.mxu1 %v3970_v42  ;;  %v3950_v33 = vcombine.high %v379_v23, %v383_v27  ;;  %v3949_v41 = vcombine.low %v379_v23, %v383_v27  ;;  %v4009_v42 = vcombine.low %v441_v19, %v445_v21  ;;  %v439_v19 = vld [vmem:[#allocation5 + $0x3b0] sm:$0xff] }
  0x87   :  { %v5269_v6 = vshrl.u32 %v173_v4, 30  ;;  %v419_v4 = vld [vmem:[#allocation5 + $0x310] sm:$0xff] }
  0x88   :  { %1222 = vmatpush1.bf16.msra.mxu0 %v3925_v7  ;;  %v443_v23 = vld [vmem:[#allocation5 + $0x3d0] sm:$0xff] }
  0x89   :  { %1152 = vmatpush1.bf16.msra.mxu1 %v3969_v51  ;;  %v175_v14 = vshll.u32 %v5269_v6, 30  ;;  %1223 = vmatprep.subr.bf16.mxu0 %v3934_v11  ;;  %v198_v1 = vsub.s32 4, %v5269_v6  ;;  %v3990_v11 = vcombine.high %v419_v4, %v423_v5 }
  0x8a   :  { %1153 = vmatprep.subr.bf16.mxu1 %v3978_v54  ;;  %v403_v54 = vld [vmem:[#allocation5 + $0x290] sm:$0xff] }
  0x8b   :  { %v176_v16 = vsub.s32 %v172_v60, %v175_v14  ;;  %v3974_v59 = vcombine.high %v403_v54, %v407_v57  ;;  %v411_v60 = vld [vmem:[#allocation5 + $0x2d0] sm:$0xff]  ;;  %v3973_v2 = vcombine.low %v403_v54, %v407_v57  ;;  %v199_v9 = vsel %vm114_vm7, %v198_v1, %v5269_v6  ;;  %v346_v57 = vld [vmem:[#allocation5 + $0xc8] sm:$0xff] }
  0x8c   :  { %1224 = vmatpush1.bf16.msra.mxu0 %v3933_v17  ;;  %v3981_v10 = vcombine.low %v411_v60, %v415_v61  ;;  %v3989_v17 = vcombine.low %v419_v4, %v423_v5  ;;  %v362_v1 = vld [vmem:[#allocation5 + $0x148] sm:$0xff]  ;;  %v4452_v5 = vld [vmem:[#allocation7 + $0x60] ss:$16 sps:$4 sm:$0xff]  }
  0x8d   :  { %1154 = vmatpush1.bf16.msra.mxu1 %v3977_v62  ;;  %v178_v26 = vsub.s32 0, %v176_v16  ;;  %1225 = vmatprep.subr.bf16.mxu0 %v3942_v22  ;;  %v4006_v22 = vcombine.high %v435_v25, %v439_v19 }
  0x8e   :  { %1155 = vmatprep.subr.bf16.mxu1 %v3986_v3  ;;  %v3982_v3 = vcombine.high %v411_v60, %v415_v61  ;;  %v358_v60 = vld [vmem:[#allocation5 + $0x128] sm:$0xff]  ;;  %v4448_v61 = vld [vmem:[#allocation7 + $0x44] ss:$16 sps:$4 sm:$0xff]  }
  0x8f   :  { %v3882_v28 = vmin.u32 %v178_v26, %v176_v16 }
  0x90   :  { %1226 = vmatpush1.bf16.msra.mxu0 %v3941_v29 }
  0x91   :  { %1156 = vmatpush1.bf16.msra.mxu1 %v3985_v8  ;;  %v180_v36 = vclz %v3882_v28  ;;  %1227 = vmatprep.subr.bf16.mxu0 %v3950_v33  ;;  %v4005_v28 = vcombine.low %v435_v25, %v439_v19  ;;  %v386_v19 = vld [vmem:[#allocation5 + $0x208] sm:$0xff] }
  0x92   :  { %1157 = vmatprep.subr.bf16.mxu1 %v3994_v13  ;;  %v431_v13 = vld [vmem:[#allocation5 + $0x370] sm:$0xff] }
  0x93   :  { %v3883_v38 = vadd.s32 4294967294, %v180_v36  ;;  %v3997_v6 = vcombine.low %v427_v12, %v431_v13 }
  0x94   :  { %1228 = vmatpush1.bf16.msra.mxu0 %v3949_v41  ;;  %v330_v41 = vld [vmem:[#allocation5 + $0x48] sm:$0xff] }
  0x95   :  { %1158 = vmatpush1.bf16.msra.mxu1 %v3993_v18  ;;  %vm3884_vm6 = vcmp.lt.s32.totalorder %v3883_v38, 0  ;;  %1229 = vmatprep.subr.bf16.mxu0 %v3958_v43  ;;  %v3998_v18 = vcombine.high %v427_v12, %v431_v13  ;;  %v4458_v12 = vld [vmem:[#allocation7 + $0x80] ss:$16 sps:$4 sm:$0xff]  }
  0x96   :  { %1159 = vmatprep.subr.bf16.mxu1 %v4002_v24  ;;  %v183_v48 = vsel %vm3884_vm6, 0, %v3883_v38  ;;  %v447_v24 = vld [vmem:[#allocation5 + $0x3f0] sm:$0xff] }
  0x97   :  { %v184_v49 = vsub.s32 32, %v183_v48  ;;  %v185_v50 = vshll.u32 %v176_v16, %v183_v48  ;;  %v188_v51 = vsub.s32 4294967266, %v183_v48  ;;  %v201_v16 = vsel %vm113_vm8, 0, %v199_v9  ;;  %v374_v9 = vld [vmem:[#allocation5 + $0x1a8] sm:$0xff] }
  0x98   :  { %1230 = vmatpush1.bf16.msra.mxu0 %v3957_v52  ;;  %v308_v21 = vadd.s32 3, %v201_v16  ;;  %v205_v27 = vand.u32 3, %v201_v16  ;;  %v4014_v29 = vcombine.high %v443_v23, %v447_v24  ;;  %v4013_v36 = vcombine.low %v443_v23, %v447_v24  ;;  %v342_v52 = vld [vmem:[#allocation5 + $0xa8] sm:$0xff]  ;;  %v4466_v16 = vld [vmem:[#allocation7 + $0xa4] ss:$16 sps:$4 sm:$0xff]  }
  0x99   :  { %1160 = vmatpush1.bf16.msra.mxu1 %v4001_v30  ;;  %v186_v55 = vshrl.u32 %v168_v45, %v184_v49  ;;  %v189_v56 = vadd.s32 127, %v188_v51  ;;  %1231 = vmatprep.subr.bf16.mxu0 %v3966_v53  ;;  %v4434_v53 = vld [vmem:[#allocation7] ss:$16 sps:$4 sm:$0xff]  }
  0x9a   :  { %1161 = vmatprep.subr.bf16.mxu1 %v4010_v35  ;;  %v309_v26 = vand.u32 3, %v308_v21  ;;  %vm210_vm10 = vcmp.eq.s32.totalorder %v205_v27, 2  ;;  %vm207_vm12 = vcmp.eq.s32.totalorder %v205_v27, 0  ;;  %vm206_vm14 = vcmp.lt.s32.totalorder %v205_v27, 2  ;;  %v390_v21 = vld [vmem:[#allocation5 + $0x228] sm:$0xff] }
  0x9b   :  { %v187_v39 = vor.u32 %v186_v55, %v185_v50  ;;  %v190_v40 = vshll.u32 %v189_v56, 23  ;;  %v3891_v50 = vcombine.low %v5272_v31, %v5274_v32  ;;  %v4436_v55 = vld [vmem:[#allocation7 + $0x4] ss:$16 sps:$4 sm:$0xff]   ;;  %v4470_v23 = vld [vmem:[#allocation7 + $0xc0] ss:$16 sps:$4 sm:$0xff]   ;;  %v398_v27 = vld [vmem:[#allocation5 + $0x268] sm:$0xff] }
  0x9c   :  { %1232 = vmatpush1.bf16.msra.mxu0 %v3965_v58  ;;  %vm314_vm9 = vcmp.eq.s32.totalorder %v309_v26, 2  ;;  %vm311_vm11 = vcmp.eq.s32.totalorder %v309_v26, 0  ;;  %vm310_vm13 = vcmp.lt.s32.totalorder %v309_v26, 2  ;;  %v4442_v31 = vld [vmem:[#allocation7 + $0x24] ss:$16 sps:$4 sm:$0xff]   ;;  %v394_v26 = vld [vmem:[#allocation5 + $0x248] sm:$0xff] }
  0x9d   :  { %1162 = vmatpush1.bf16.msra.mxu1 %v4009_v42  ;;  %v191_v62 = vor.u32 4788187, %v190_v40  ;;  %v194_v63 = vcvt.s32.f32 %v187_v39  ;;  %1233 = vmatprep.subr.bf16.mxu0 %v3974_v59  ;;  %v334_v42 = vld [vmem:[#allocation5 + $0x68] sm:$0xff]  ;;  %v4440_v40 = vld [vmem:[#allocation7 + $0x20] ss:$16 sps:$4 sm:$0xff]  }
  0x9e   :  { %1172 = vmatprep.subr.bf16.mxu1 %v3892_v46  ;;  %v3900_v54 = vcombine.high %v330_v41, %v334_v42  ;;  %v3899_v56 = vcombine.low %v330_v41, %v334_v42  ;;  %v350_v39 = vld [vmem:[#allocation5 + $0xe8] sm:$0xff]  ;;  %v3963_v41 = vcombine.low %v394_v26, %v398_v27 }
  0x9f   :  { %v192_v0 = vand.u32 2147483647, %v191_v62  ;;  %v354_v59 = vld [vmem:[#allocation5 + $0x108] sm:$0xff]  ;;  %v3916_v62 = vcombine.high %v346_v57, %v350_v39 }
  0xa0   :  { %1234 = vmatpush1.bf16.msra.mxu0 %v3973_v2  ;;  %v366_v2 = vld [vmem:[#allocation5 + $0x168] sm:$0xff]  ;;  %v3924_v4 = vcombine.high %v354_v59, %v358_v60 }
  0xa1   :  { %v195_v7 = vmul.f32 %v194_v63, %v192_v0  ;;  %1235 = vmatprep.subr.bf16.mxu0 %v3982_v3  ;;  %v4446_v63 = vld [vmem:[#allocation7 + $0x40] ss:$16 sps:$4 sm:$0xff]   ;;  %v3915_v0 = vcombine.low %v346_v57, %v350_v39  ;;  %v4454_v3 = vld [vmem:[#allocation7 + $0x64] ss:$16 sps:$4 sm:$0xff]   ;;  %v3931_v13 = vcombine.low %v362_v1, %v366_v2  ;;  %v410_v42 = vld [vmem:[#allocation5 + $0x2c8] sm:$0xff] }
  0xa2   :  { %v4502_v57 = vld [vmem:[#allocation7 + $0x164] ss:$16 sps:$4 sm:$0xff]  }
  0xa3   :  { %v196_v8 = vxor.u32 2147483648, %v195_v7 }
  0xa4   :  { %1236 = vmatpush1.bf16.msra.mxu0 %v3981_v10  ;;  %v4460_v10 = vld [vmem:[#allocation7 + $0x84] ss:$16 sps:$4 sm:$0xff]  }
  0xa5   :  { %v197_v14 = vsel %vm114_vm7, %v196_v8, %v195_v7  ;;  %1237 = vmatprep.subr.bf16.mxu0 %v3990_v11  ;;  %v3923_v7 = vcombine.low %v354_v59, %v358_v60  ;;  %v370_v8 = vld [vmem:[#allocation5 + $0x188] sm:$0xff]  ;;  %v3932_v11 = vcombine.high %v362_v1, %v366_v2  ;;  %v4508_v59 = vld [vmem:[#allocation7 + $0x184] ss:$16 sps:$4 sm:$0xff]  }
  0xa6   :  { %v200_v15 = vsel %vm113_vm8, %v5219_v20, %v197_v14  ;;  %v338_v20 = vld [vmem:[#allocation5 + $0x88] sm:$0xff]  ;;  %v3939_v25 = vcombine.low %v370_v8, %v374_v9  ;;  %v4514_v1 = vld [vmem:[#allocation7 + $0x1a4] ss:$16 sps:$4 sm:$0xff]  }
  0xa7   :  { %4930 = vcosq.f32 %v200_v15  ;;  %v3908_v32 = vcombine.high %v338_v20, %v342_v52  ;;  %v3907_v58 = vcombine.low %v338_v20, %v342_v52  ;;  %v378_v14 = vld [vmem:[#allocation5 + $0x1c8] sm:$0xff]  ;;  %v4496_v20 = vld [vmem:[#allocation7 + $0x144] ss:$16 sps:$4 sm:$0xff]  }
  0xa8   :  { %4932 = vsinq.f32 %v200_v15  ;;  %1238 = vmatpush1.bf16.msra.mxu0 %v3989_v17  ;;  %v382_v15 = vld [vmem:[#allocation5 + $0x1e8] sm:$0xff]  ;;  %v3940_v17 = vcombine.high %v370_v8, %v374_v9 }
  0xa9   :  { %1239 = vmatprep.subr.bf16.mxu0 %v3998_v18  ;;  %v4464_v18 = vld [vmem:[#allocation7 + $0xa0] ss:$16 sps:$4 sm:$0xff]   ;;  %v3947_v24 = vcombine.low %v378_v14, %v382_v15 }
  0xac   :  { %1240 = vmatpush1.bf16.msra.mxu0 %v3997_v6  ;;  %v4472_v6 = vld [vmem:[#allocation7 + $0xc4] ss:$16 sps:$4 sm:$0xff]  }
  0xad   :  { %1241 = vmatprep.subr.bf16.mxu0 %v4006_v22  ;;  %v3948_v22 = vcombine.high %v378_v14, %v382_v15  ;;  %v340_v14 = vld [vmem:[#allocation5 + $0x98] sm:$0xff] }
  0xae   :  { %v344_v15 = vld [vmem:[#allocation5 + $0xb8] sm:$0xff] }
  0xb0   :  { %1242 = vmatpush1.bf16.msra.mxu0 %v4005_v28  ;;  %v4478_v28 = vld [vmem:[#allocation7 + $0xe4] ss:$16 sps:$4 sm:$0xff]  }
  0xb1   :  { %v4931_v30 = vpop.eup %4930  ;;  %1243 = vmatprep.subr.bf16.mxu0 %v4014_v29  ;;  %v3956_v29 = vcombine.high %v386_v19, %v390_v21 }
  0xb2   :  { %v4933_v33 = vpop.eup %4932  ;;  %v211_v34 = vxor.u32 2147483648, %v4931_v30 }
  0xb3   :  { %v208_v35 = vxor.u32 2147483648, %v4933_v33 }
  0xb4   :  { %v316_v37 = vsel %vm314_vm9, %v211_v34, %v4933_v33  ;;  %v212_v38 = vsel %vm210_vm10, %v211_v34, %v4933_v33  ;;  %1244 = vmatpush1.bf16.msra.mxu0 %v4013_v36  ;;  %v3955_v33 = vcombine.low %v386_v19, %v390_v21  ;;  %v402_v34 = vld [vmem:[#allocation5 + $0x288] sm:$0xff]  ;;  %v4484_v36 = vld [vmem:[#allocation7 + $0x104] ss:$16 sps:$4 sm:$0xff]   ;;  %v3912_v19 = vcombine.high %v340_v14, %v344_v15 }
  0xb5   :  { %v313_v43 = vsel %vm311_vm11, %v4931_v30, %v208_v35  ;;  %v209_v44 = vsel %vm207_vm12, %v4931_v30, %v208_v35  ;;  %2869 = vmatprep.subr.bf16.mxu0 %v4436_v55  ;;  %v4476_v30 = vld [vmem:[#allocation7 + $0xe0] ss:$16 sps:$4 sm:$0xff]   ;;  %v406_v35 = vld [vmem:[#allocation5 + $0x2a8] sm:$0xff]  ;;  %v3911_v21 = vcombine.low %v340_v14, %v344_v15 }
  0xb6   :  { %v317_v45 = vsel %vm310_vm13, %v313_v43, %v316_v37  ;;  %v213_v46 = vsel %vm206_vm14, %v209_v44, %v212_v38  ;;  %v3964_v37 = vcombine.high %v394_v26, %v398_v27  ;;  %v4482_v38 = vld [vmem:[#allocation7 + $0x100] ss:$16 sps:$4 sm:$0xff]   ;;  %v414_v43 = vld [vmem:[#allocation5 + $0x2e8] sm:$0xff]  ;;  %v4490_v44 = vld [vmem:[#allocation7 + $0x124] ss:$16 sps:$4 sm:$0xff]  }
  0xb7   :  { %v318_v47 = vsel %vm204_vm15, nan, %v317_v45  ;;  %v214_v48 = vsel %vm204_vm15, nan, %v213_v46  ;;  %v3972_v45 = vcombine.high %v402_v34, %v406_v35  ;;  %v4488_v46 = vld [vmem:[#allocation7 + $0x120] ss:$16 sps:$4 sm:$0xff]   ;;  %v3980_v52 = vcombine.high %v410_v42, %v414_v43  ;;  %v426_v55 = vld [vmem:[#allocation5 + $0x348] sm:$0xff]  ;;  %v364_v26 = vld [vmem:[#allocation5 + $0x158] sm:$0xff] }
  0xb8   :  { %v5287_v49 = vpack.c.bf16 %v318_v47, %v318_v47  ;;  %v5291_v51 = vpack.c.bf16 %v214_v48, %v214_v48  ;;  %v3971_v47 = vcombine.low %v402_v34, %v406_v35  ;;  %v418_v48 = vld [vmem:[#allocation5 + $0x308] sm:$0xff]  ;;  %v368_v27 = vld [vmem:[#allocation5 + $0x178] sm:$0xff] }
  0xb9   :  { %v3935_v34 = vcombine.low %v364_v26, %v368_v27  ;;  %v4439_v14 = vld [vmem:[#allocation7 + $0xc] ss:$16 sps:$4 sm:$0xff]   ;;  %v4437_v15 = vld [vmem:[#allocation7 + $0x8] ss:$16 sps:$4 sm:$0xff]  }
  0xba   :  { %1163 = vmatprep.mubr.bf16.mxu1 %v5287_v49  ;;  %1245 = vmatprep.mubr.bf16.mxu0 %v5287_v49 }
  0xbb   :  { %1164 = vmatmul.mubr.bf16.vlgmr.msra.gmra.mrb[0].mxu1 %v5291_v51  ;;  %1246 = vmatmul.mubr.bf16.vlgmr.msra.gmra.mrb[0].mxu0 %v5291_v51 }
  0xbc   :  { %1173 = vmatpush1.bf16.msra.mxu1 %v3891_v50  ;;  %1204 = vmatprep.mubr.bf16.mxu1 %v5287_v49  ;;  %v422_v50 = vld [vmem:[#allocation5 + $0x328] sm:$0xff] }
  0xbd   :  { %1174 = vmatprep.subr.bf16.mxu1 %v3900_v54  ;;  %2870 = vmatpush1.bf16.msra.mxu0 %v4434_v53  ;;  %v4494_v53 = vld [vmem:[#allocation7 + $0x140] ss:$16 sps:$4 sm:$0xff]   ;;  %v3979_v54 = vcombine.low %v410_v42, %v414_v43  ;;  %v3988_v39 = vcombine.high %v418_v48, %v422_v50 }
  0xbe   :  { %2871 = vmatprep.subr.bf16.mxu0 %v4442_v31  ;;  %v4500_v31 = vld [vmem:[#allocation7 + $0x160] ss:$16 sps:$4 sm:$0xff]  }
  0xc0   :  { %1175 = vmatpush1.bf16.msra.mxu1 %v3899_v56  ;;  %v430_v56 = vld [vmem:[#allocation5 + $0x368] sm:$0xff] }
  0xc1   :  { %1176 = vmatprep.subr.bf16.mxu1 %v3908_v32  ;;  %2872 = vmatpush1.bf16.msra.mxu0 %v4440_v40  ;;  %v3987_v32 = vcombine.low %v418_v48, %v422_v50  ;;  %v434_v40 = vld [vmem:[#allocation5 + $0x388] sm:$0xff]  ;;  %v3996_v60 = vcombine.high %v426_v55, %v430_v56 }
  0xc2   :  { %2873 = vmatprep.subr.bf16.mxu0 %v4448_v61  ;;  %v4506_v61 = vld [vmem:[#allocation7 + $0x180] ss:$16 sps:$4 sm:$0xff]  }
  0xc4   :  { %1177 = vmatpush1.bf16.msra.mxu1 %v3907_v58  ;;  %v438_v58 = vld [vmem:[#allocation5 + $0x3a8] sm:$0xff] }
  0xc5   :  { %1178 = vmatprep.subr.bf16.mxu1 %v3916_v62  ;;  %2874 = vmatpush1.bf16.msra.mxu0 %v4446_v63  ;;  %v3995_v62 = vcombine.low %v426_v55, %v430_v56  ;;  %v442_v63 = vld [vmem:[#allocation5 + $0x3c8] sm:$0xff]  ;;  %v4004_v2 = vcombine.high %v434_v40, %v438_v58  ;;  %v404_v56 = vld [vmem:[#allocation5 + $0x298] sm:$0xff] }
  0xc6   :  { %2875 = vmatprep.subr.bf16.mxu0 %v4454_v3  ;;  %v4512_v3 = vld [vmem:[#allocation7 + $0x1a0] ss:$16 sps:$4 sm:$0xff]  }
  0xc8   :  { %1179 = vmatpush1.bf16.msra.mxu1 %v3915_v0  ;;  %v446_v0 = vld [vmem:[#allocation5 + $0x3e8] sm:$0xff] }
  0xc9   :  { %1180 = vmatprep.subr.bf16.mxu1 %v3924_v4  ;;  %2876 = vmatpush1.bf16.msra.mxu0 %v4452_v5  ;;  %v4003_v4 = vcombine.low %v434_v40, %v438_v58  ;;  %v324_v5 = vld [vmem:[#allocation5 + $0x18] sm:$0xff]  ;;  %v4012_v8 = vcombine.high %v442_v63, %v446_v0  ;;  %v4011_v9 = vcombine.low %v442_v63, %v446_v0 }
  0xca   :  { %2877 = vmatprep.subr.bf16.mxu0 %v4460_v10  ;;  %v332_v10 = vld [vmem:[#allocation5 + $0x58] sm:$0xff] }
  0xcb   :  { %v416_v40 = vld [vmem:[#allocation5 + $0x2f8] sm:$0xff] }
  0xcc   :  { %1181 = vmatpush1.bf16.msra.mxu1 %v3923_v7  ;;  %v328_v7 = vld [vmem:[#allocation5 + $0x38] sm:$0xff] }
  0xcd   :  { %1182 = vmatprep.subr.bf16.mxu1 %v3932_v11  ;;  %2878 = vmatpush1.bf16.msra.mxu0 %v4458_v12  ;;  %v336_v11 = vld [vmem:[#allocation5 + $0x78] sm:$0xff]  ;;  %v3896_v12 = vcombine.high %v324_v5, %v328_v7 }
  0xce   :  { %2879 = vmatprep.subr.bf16.mxu0 %v4466_v16  ;;  %v3904_v16 = vcombine.high %v332_v10, %v336_v11  ;;  %v428_v0 = vld [vmem:[#allocation5 + $0x358] sm:$0xff] }
  0xd0   :  { %1183 = vmatpush1.bf16.msra.mxu1 %v3931_v13  ;;  %v3895_v13 = vcombine.low %v324_v5, %v328_v7  ;;  %v440_v5 = vld [vmem:[#allocation5 + $0x3b8] sm:$0xff] }
  0xd1   :  { %1184 = vmatprep.subr.bf16.mxu1 %v3940_v17  ;;  %2880 = vmatpush1.bf16.msra.mxu0 %v4464_v18  ;;  %v3903_v17 = vcombine.low %v332_v10, %v336_v11  ;;  %v348_v18 = vld [vmem:[#allocation5 + $0xd8] sm:$0xff] }
  0xd2   :  { %2881 = vmatprep.subr.bf16.mxu0 %v4472_v6  ;;  %v356_v6 = vld [vmem:[#allocation5 + $0x118] sm:$0xff] }
  0xd3   :  { %v448_v10 = vld [vmem:[#allocation5 + $0x3f8] sm:$0xff] }
  0xd4   :  { %1185 = vmatpush1.bf16.msra.mxu1 %v3939_v25  ;;  %v352_v25 = vld [vmem:[#allocation5 + $0xf8] sm:$0xff] }
  0xd5   :  { %1186 = vmatprep.subr.bf16.mxu1 %v3948_v22  ;;  %2882 = vmatpush1.bf16.msra.mxu0 %v4470_v23  ;;  %v360_v22 = vld [vmem:[#allocation5 + $0x138] sm:$0xff]  ;;  %v3920_v23 = vcombine.high %v348_v18, %v352_v25 }
  0xd6   :  { %2883 = vmatprep.subr.bf16.mxu0 %v4478_v28  ;;  %v3928_v28 = vcombine.high %v356_v6, %v360_v22 }
  0xd8   :  { %1187 = vmatpush1.bf16.msra.mxu1 %v3947_v24  ;;  %v3919_v24 = vcombine.low %v348_v18, %v352_v25  ;;  %v4451_v18 = vld [vmem:[#allocation7 + $0x4c] ss:$16 sps:$4 sm:$0xff]   ;;  %v4449_v25 = vld [vmem:[#allocation7 + $0x48] ss:$16 sps:$4 sm:$0xff]  }
  0xd9   :  { %1188 = vmatprep.subr.bf16.mxu1 %v3956_v29  ;;  %2884 = vmatpush1.bf16.msra.mxu0 %v4476_v30  ;;  %v3927_v29 = vcombine.low %v356_v6, %v360_v22  ;;  %v372_v30 = vld [vmem:[#allocation5 + $0x198] sm:$0xff] }
  0xda   :  { %2885 = vmatprep.subr.bf16.mxu0 %v4484_v36  ;;  %v4520_v36 = vld [vmem:[#allocation7 + $0x1c4] ss:$16 sps:$4 sm:$0xff]   ;;  %v4463_v6 = vld [vmem:[#allocation7 + $0x8c] ss:$16 sps:$4 sm:$0xff]   ;;  %v4461_v22 = vld [vmem:[#allocation7 + $0x88] ss:$16 sps:$4 sm:$0xff]  }
  0xdc   :  { %1189 = vmatpush1.bf16.msra.mxu1 %v3955_v33  ;;  %v376_v33 = vld [vmem:[#allocation5 + $0x1b8] sm:$0xff] }
  0xdd   :  { %1190 = vmatprep.subr.bf16.mxu1 %v3964_v37  ;;  %2886 = vmatpush1.bf16.msra.mxu0 %v4482_v38  ;;  %v3944_v35 = vcombine.high %v372_v30, %v376_v33  ;;  %v380_v37 = vld [vmem:[#allocation5 + $0x1d8] sm:$0xff]  ;;  %v3943_v42 = vcombine.low %v372_v30, %v376_v33 }
  0xde   :  { %2887 = vmatprep.subr.bf16.mxu0 %v4490_v44  ;;  %v384_v38 = vld [vmem:[#allocation5 + $0x1f8] sm:$0xff]  ;;  %v4526_v44 = vld [vmem:[#allocation7 + $0x1e4] ss:$16 sps:$4 sm:$0xff]  }
  0xdf   :  { %v3952_v43 = vcombine.high %v380_v37, %v384_v38  ;;  %v3951_v48 = vcombine.low %v380_v37, %v384_v38  ;;  %v4485_v30 = vld [vmem:[#allocation7 + $0x108] ss:$16 sps:$4 sm:$0xff]   ;;  %v4493_v33 = vld [vmem:[#allocation7 + $0x12c] ss:$16 sps:$4 sm:$0xff]  }
  0xe0   :  { %1191 = vmatpush1.bf16.msra.mxu1 %v3963_v41  ;;  %v4518_v41 = vld [vmem:[#allocation7 + $0x1c0] ss:$16 sps:$4 sm:$0xff]   ;;  %v4503_v37 = vld [vmem:[#allocation7 + $0x168] ss:$16 sps:$4 sm:$0xff]   ;;  %v4511_v38 = vld [vmem:[#allocation7 + $0x18c] ss:$16 sps:$4 sm:$0xff]  }
  0xe1   :  { %1192 = vmatprep.subr.bf16.mxu1 %v3972_v45  ;;  %2888 = vmatpush1.bf16.msra.mxu0 %v4488_v46  ;;  %v388_v45 = vld [vmem:[#allocation5 + $0x218] sm:$0xff] }
  0xe2   :  { %2889 = vmatprep.subr.bf16.mxu0 %v4496_v20  ;;  %v392_v46 = vld [vmem:[#allocation5 + $0x238] sm:$0xff]  ;;  %v4532_v20 = vld [vmem:[#allocation7 + $0x204] ss:$16 sps:$4 sm:$0xff]  }
  0xe3   :  { %v3960_v50 = vcombine.high %v388_v45, %v392_v46 }
  0xe4   :  { %1193 = vmatpush1.bf16.msra.mxu1 %v3971_v47  ;;  %v4524_v47 = vld [vmem:[#allocation7 + $0x1e0] ss:$16 sps:$4 sm:$0xff]  }
  0xe5   :  { %1194 = vmatprep.subr.bf16.mxu1 %v3980_v52  ;;  %2890 = vmatpush1.bf16.msra.mxu0 %v4494_v53  ;;  %v396_v52 = vld [vmem:[#allocation5 + $0x258] sm:$0xff] }
  0xe6   :  { %2891 = vmatprep.subr.bf16.mxu0 %v4502_v57  ;;  %v400_v53 = vld [vmem:[#allocation5 + $0x278] sm:$0xff] }
  0xe7   :  { %v3968_v55 = vcombine.high %v396_v52, %v400_v53  ;;  %v408_v57 = vld [vmem:[#allocation5 + $0x2b8] sm:$0xff] }
  0xe8   :  { %1195 = vmatpush1.bf16.msra.mxu1 %v3979_v54  ;;  %v3959_v54 = vcombine.low %v388_v45, %v392_v46  ;;  %v3975_v58 = vcombine.low %v404_v56, %v408_v57  ;;  %v4521_v45 = vld [vmem:[#allocation7 + $0x1c8] ss:$16 sps:$4 sm:$0xff]   ;;  %v4529_v46 = vld [vmem:[#allocation7 + $0x1ec] ss:$16 sps:$4 sm:$0xff]  }
  0xe9   :  { %1196 = vmatprep.subr.bf16.mxu1 %v3988_v39  ;;  %2892 = vmatpush1.bf16.msra.mxu0 %v4500_v31  ;;  %v3967_v39 = vcombine.low %v396_v52, %v400_v53  ;;  %v3976_v31 = vcombine.high %v404_v56, %v408_v57  ;;  %v5309_v53 = vld [vmem:[%s5384_s3] sm:$0xff] }
  0xea   :  { %2893 = vmatprep.subr.bf16.mxu0 %v4508_v59 }
  0xec   :  { %1197 = vmatpush1.bf16.msra.mxu1 %v3987_v32  ;;  %v412_v32 = vld [vmem:[#allocation5 + $0x2d8] sm:$0xff] }
  0xed   :  { %1198 = vmatprep.subr.bf16.mxu1 %v3996_v60  ;;  %2894 = vmatpush1.bf16.msra.mxu0 %v4506_v61  ;;  %v3984_v59 = vcombine.high %v412_v32, %v416_v40  ;;  %v420_v60 = vld [vmem:[#allocation5 + $0x318] sm:$0xff] }
  0xee   :  { %2895 = vmatprep.subr.bf16.mxu0 %v4514_v1  ;;  %v424_v61 = vld [vmem:[#allocation5 + $0x338] sm:$0xff] }
  0xef   :  { %v3992_v63 = vcombine.high %v420_v60, %v424_v61  ;;  %v432_v1 = vld [vmem:[#allocation5 + $0x378] sm:$0xff] }
  0xf0   :  { %1199 = vmatpush1.bf16.msra.mxu1 %v3995_v62  ;;  %v3983_v62 = vcombine.low %v412_v32, %v416_v40  ;;  %v3999_v7 = vcombine.low %v428_v0, %v432_v1 }
  0xf1   :  { %1200 = vmatprep.subr.bf16.mxu1 %v4004_v2  ;;  %2896 = vmatpush1.bf16.msra.mxu0 %v4512_v3  ;;  %v3991_v2 = vcombine.low %v420_v60, %v424_v61  ;;  %v4000_v3 = vcombine.high %v428_v0, %v432_v1 }
  0xf2   :  { %2897 = vmatprep.subr.bf16.mxu0 %v4520_v36  ;;  %v4505_v36 = vld [vmem:[#allocation7 + $0x16c] ss:$16 sps:$4 sm:$0xff]  }
  0xf4   :  { %1201 = vmatpush1.bf16.msra.mxu1 %v4003_v4  ;;  %v436_v4 = vld [vmem:[#allocation5 + $0x398] sm:$0xff] }
  0xf5   :  { %1202 = vmatprep.subr.bf16.mxu1 %v4012_v8  ;;  %2898 = vmatpush1.bf16.msra.mxu0 %v4518_v41  ;;  %v4008_v8 = vcombine.high %v436_v4, %v440_v5  ;;  %v4007_v11 = vcombine.low %v436_v4, %v440_v5  ;;  %v4509_v41 = vld [vmem:[#allocation7 + $0x188] ss:$16 sps:$4 sm:$0xff]   ;;  %v4538_v5 = vld [vmem:[#allocation7 + $0x224] ss:$16 sps:$4 sm:$0xff]  }
  0xf6   :  { %2899 = vmatprep.subr.bf16.mxu0 %v4526_v44  ;;  %v4523_v44 = vld [vmem:[#allocation7 + $0x1cc] ss:$16 sps:$4 sm:$0xff]  }
  0xf8   :  { %1203 = vmatpush1.bf16.msra.mxu1 %v4011_v9  ;;  %v444_v9 = vld [vmem:[#allocation5 + $0x3d8] sm:$0xff] }
  0xf9   :  { %1254 = vmatprep.subr.bf16.mxu1 %v3896_v12  ;;  %2900 = vmatpush1.bf16.msra.mxu0 %v4524_v47  ;;  %v4016_v12 = vcombine.high %v444_v9, %v448_v10  ;;  %v4527_v47 = vld [vmem:[#allocation7 + $0x1e8] ss:$16 sps:$4 sm:$0xff]  }
  0xfa   :  { %2910 = vmatprep.subr.bf16.mxu0 %v4532_v20 }
  0xfb   :  { %1205 = vmatmul.mubr.bf16.vlgmr.msra.gmra.mrb[4].mxu1 %v5291_v51 }
  0xfc   :  { %1255 = vmatpush1.bf16.msra.mxu1 %v3895_v13  ;;  %1286 = vmatprep.mubr.bf16.mxu1 %v5287_v49  ;;  %v3936_v49 = vcombine.high %v364_v26, %v368_v27  ;;  %v4015_v13 = vcombine.low %v444_v9, %v448_v10  ;;  %v4473_v26 = vld [vmem:[#allocation7 + $0xc8] ss:$16 sps:$4 sm:$0xff]   ;;  %v4481_v27 = vld [vmem:[#allocation7 + $0xec] ss:$16 sps:$4 sm:$0xff]   ;;  %v4544_v10 = vld [vmem:[#allocation7 + $0x244] ss:$16 sps:$4 sm:$0xff]  }
  0xfd   :  { %1256 = vmatprep.subr.bf16.mxu1 %v3904_v16  ;;  %v4445_v16 = vld [vmem:[#allocation7 + $0x2c] ss:$16 sps:$4 sm:$0xff]   ;;  %v4539_v9 = vld [vmem:[#allocation7 + $0x228] ss:$16 sps:$4 sm:$0xff]  }
 0x100   :  { %1257 = vmatpush1.bf16.msra.mxu1 %v3903_v17  ;;  %v4443_v17 = vld [vmem:[#allocation7 + $0x28] ss:$16 sps:$4 sm:$0xff]  }
 0x101   :  { %1258 = vmatprep.subr.bf16.mxu1 %v3912_v19  ;;  %v4457_v19 = vld [vmem:[#allocation7 + $0x6c] ss:$16 sps:$4 sm:$0xff]  }
 0x104   :  { %1259 = vmatpush1.bf16.msra.mxu1 %v3911_v21  ;;  %v4455_v21 = vld [vmem:[#allocation7 + $0x68] ss:$16 sps:$4 sm:$0xff]  }
 0x105   :  { %1260 = vmatprep.subr.bf16.mxu1 %v3920_v23  ;;  %v4469_v23 = vld [vmem:[#allocation7 + $0xac] ss:$16 sps:$4 sm:$0xff]  }
 0x108   :  { %1261 = vmatpush1.bf16.msra.mxu1 %v3919_v24  ;;  %v4467_v24 = vld [vmem:[#allocation7 + $0xa8] ss:$16 sps:$4 sm:$0xff]  }
 0x109   :  { %1262 = vmatprep.subr.bf16.mxu1 %v3928_v28  ;;  %v4479_v28 = vld [vmem:[#allocation7 + $0xe8] ss:$16 sps:$4 sm:$0xff]  }
 0x10c   :  { %1263 = vmatpush1.bf16.msra.mxu1 %v3927_v29  ;;  %v4487_v29 = vld [vmem:[#allocation7 + $0x10c] ss:$16 sps:$4 sm:$0xff]  }
 0x10d   :  { %1264 = vmatprep.subr.bf16.mxu1 %v3936_v49  ;;  %v4491_v49 = vld [vmem:[#allocation7 + $0x128] ss:$16 sps:$4 sm:$0xff]  }
 0x110   :  { %1265 = vmatpush1.bf16.msra.mxu1 %v3935_v34  ;;  %v4499_v34 = vld [vmem:[#allocation7 + $0x14c] ss:$16 sps:$4 sm:$0xff]  }
 0x111   :  { %1266 = vmatprep.subr.bf16.mxu1 %v3944_v35  ;;  %v4497_v35 = vld [vmem:[#allocation7 + $0x148] ss:$16 sps:$4 sm:$0xff]  }
 0x114   :  { %1267 = vmatpush1.bf16.msra.mxu1 %v3943_v42  ;;  %v4517_v42 = vld [vmem:[#allocation7 + $0x1ac] ss:$16 sps:$4 sm:$0xff]  }
 0x115   :  { %1268 = vmatprep.subr.bf16.mxu1 %v3952_v43  ;;  %v4515_v43 = vld [vmem:[#allocation7 + $0x1a8] ss:$16 sps:$4 sm:$0xff]  }
 0x118   :  { %1269 = vmatpush1.bf16.msra.mxu1 %v3951_v48  ;;  %v4535_v48 = vld [vmem:[#allocation7 + $0x20c] ss:$16 sps:$4 sm:$0xff]  }
 0x119   :  { %1270 = vmatprep.subr.bf16.mxu1 %v3960_v50  ;;  %v451_v50 = vlaneseq }
 0x11b   :  { %v5301_v20 = vshrl.u32 %v451_v50, 7  ;;  %v4601_v50 = vld [vmem:[#allocation7 + $0x36c] ss:$16 sps:$4 sm:$0xff]  }
 0x11c   :  { %1271 = vmatpush1.bf16.msra.mxu1 %v3959_v54 }
 0x11d   :  { %1272 = vmatprep.subr.bf16.mxu1 %v3968_v55  ;;  %v5304_v52 = vsub.s32 0, %v5301_v20  ;;  %v5312_v54 = vsub.s32 1, %v5301_v20 }
 0x11f   :  { %v454_v55 = vrot.slane %v5309_v53, %v5304_v52  ;;  %v458_v56 = vrot.slane %v5309_v53, %v5312_v54 }
 0x120   :  { %1273 = vmatpush1.bf16.msra.mxu1 %v3967_v39 }
 0x121   :  { %1274 = vmatprep.subr.bf16.mxu1 %v3976_v31 }
 0x124   :  { %1275 = vmatpush1.bf16.msra.mxu1 %v3975_v58 }
 0x125   :  { %1276 = vmatprep.subr.bf16.mxu1 %v3984_v59 }
 0x128   :  { %1277 = vmatpush1.bf16.msra.mxu1 %v3983_v62 }
 0x129   :  { %1278 = vmatprep.subr.bf16.mxu1 %v3992_v63 }
 0x12c   :  { %1279 = vmatpush1.bf16.msra.mxu1 %v3991_v2  ;;  %v4530_v2 = vld [vmem:[#allocation7 + $0x200] ss:$16 sps:$4 sm:$0xff]  }
 0x12d   :  { %1280 = vmatprep.subr.bf16.mxu1 %v4000_v3  ;;  %v4533_v3 = vld [vmem:[#allocation7 + $0x208] ss:$16 sps:$4 sm:$0xff]  }
 0x130   :  { %1281 = vmatpush1.bf16.msra.mxu1 %v3999_v7  ;;  %v4541_v7 = vld [vmem:[#allocation7 + $0x22c] ss:$16 sps:$4 sm:$0xff]  }
 0x131   :  { %1282 = vmatprep.subr.bf16.mxu1 %v4008_v8  ;;  %v4536_v8 = vld [vmem:[#allocation7 + $0x220] ss:$16 sps:$4 sm:$0xff]  }
 0x134   :  { %1283 = vmatpush1.bf16.msra.mxu1 %v4007_v11  ;;  %v4547_v11 = vld [vmem:[#allocation7 + $0x24c] ss:$16 sps:$4 sm:$0xff]  }
 0x135   :  { %1284 = vmatprep.subr.bf16.mxu1 %v4016_v12  ;;  %v4542_v12 = vld [vmem:[#allocation7 + $0x240] ss:$16 sps:$4 sm:$0xff]  }
 0x138   :  { %1285 = vmatpush1.bf16.msra.mxu1 %v4015_v13  ;;  %v4545_v13 = vld [vmem:[#allocation7 + $0x248] ss:$16 sps:$4 sm:$0xff]  }
 0x139   :  { %3033 = vmatprep.subr.bf16.mxu1 %v4439_v14  ;;  %v4550_v14 = vld [vmem:[#allocation7 + $0x264] ss:$16 sps:$4 sm:$0xff]  }
 0x13b   :  { %1287 = vmatmul.mubr.bf16.vlgmr.msra.gmra.mrb[8].mxu1 %v5291_v51  ;;  %v4475_v51 = vld [vmem:[#allocation7 + $0xcc] ss:$16 sps:$4 sm:$0xff]  }
 0x13c   :  { %3034 = vmatpush1.bf16.msra.mxu1 %v4437_v15  ;;  %v4553_v15 = vld [vmem:[#allocation7 + $0x26c] ss:$16 sps:$4 sm:$0xff]  }
 0x13d   :  { %3035 = vmatprep.subr.bf16.mxu1 %v4445_v16  ;;  %v4548_v16 = vld [vmem:[#allocation7 + $0x260] ss:$16 sps:$4 sm:$0xff]  }
 0x140   :  { %3036 = vmatpush1.bf16.msra.mxu1 %v4443_v17  ;;  %v4551_v17 = vld [vmem:[#allocation7 + $0x268] ss:$16 sps:$4 sm:$0xff]  }
 0x141   :  { %3037 = vmatprep.subr.bf16.mxu1 %v4451_v18  ;;  %v4556_v18 = vld [vmem:[#allocation7 + $0x284] ss:$16 sps:$4 sm:$0xff]  }
 0x144   :  { %3038 = vmatpush1.bf16.msra.mxu1 %v4449_v25  ;;  %v4559_v25 = vld [vmem:[#allocation7 + $0x28c] ss:$16 sps:$4 sm:$0xff]  }
 0x145   :  { %3039 = vmatprep.subr.bf16.mxu1 %v4457_v19  ;;  %v4554_v19 = vld [vmem:[#allocation7 + $0x280] ss:$16 sps:$4 sm:$0xff]  }
 0x148   :  { %3040 = vmatpush1.bf16.msra.mxu1 %v4455_v21  ;;  %v4557_v21 = vld [vmem:[#allocation7 + $0x288] ss:$16 sps:$4 sm:$0xff]  }
 0x149   :  { %3041 = vmatprep.subr.bf16.mxu1 %v4463_v6  ;;  %v4562_v6 = vld [vmem:[#allocation7 + $0x2a4] ss:$16 sps:$4 sm:$0xff]  }
 0x14c   :  { %3042 = vmatpush1.bf16.msra.mxu1 %v4461_v22  ;;  %v4565_v22 = vld [vmem:[#allocation7 + $0x2ac] ss:$16 sps:$4 sm:$0xff]  }
 0x14d   :  { %3043 = vmatprep.subr.bf16.mxu1 %v4469_v23  ;;  %v4560_v23 = vld [vmem:[#allocation7 + $0x2a0] ss:$16 sps:$4 sm:$0xff]  }
 0x150   :  { %3044 = vmatpush1.bf16.msra.mxu1 %v4467_v24  ;;  %v4563_v24 = vld [vmem:[#allocation7 + $0x2a8] ss:$16 sps:$4 sm:$0xff]  }
 0x151   :  { %3045 = vmatprep.subr.bf16.mxu1 %v4475_v51  ;;  %v4568_v51 = vld [vmem:[#allocation7 + $0x2c4] ss:$16 sps:$4 sm:$0xff]  }
 0x154   :  { %3046 = vmatpush1.bf16.msra.mxu1 %v4473_v26  ;;  %v4571_v26 = vld [vmem:[#allocation7 + $0x2cc] ss:$16 sps:$4 sm:$0xff]  }
 0x155   :  { %3047 = vmatprep.subr.bf16.mxu1 %v4481_v27  ;;  %v4566_v27 = vld [vmem:[#allocation7 + $0x2c0] ss:$16 sps:$4 sm:$0xff]  }
 0x158   :  { %3048 = vmatpush1.bf16.msra.mxu1 %v4479_v28  ;;  %v4569_v28 = vld [vmem:[#allocation7 + $0x2c8] ss:$16 sps:$4 sm:$0xff]  }
 0x159   :  { %3049 = vmatprep.subr.bf16.mxu1 %v4487_v29  ;;  %v4574_v29 = vld [vmem:[#allocation7 + $0x2e4] ss:$16 sps:$4 sm:$0xff]  }
 0x15c   :  { %3050 = vmatpush1.bf16.msra.mxu1 %v4485_v30  ;;  %v4577_v30 = vld [vmem:[#allocation7 + $0x2ec] ss:$16 sps:$4 sm:$0xff]  }
 0x15d   :  { %3051 = vmatprep.subr.bf16.mxu1 %v4493_v33  ;;  %v4572_v33 = vld [vmem:[#allocation7 + $0x2e0] ss:$16 sps:$4 sm:$0xff]  }
 0x160   :  { %3052 = vmatpush1.bf16.msra.mxu1 %v4491_v49  ;;  %v4575_v49 = vld [vmem:[#allocation7 + $0x2e8] ss:$16 sps:$4 sm:$0xff]  }
 0x161   :  { %3053 = vmatprep.subr.bf16.mxu1 %v4499_v34  ;;  %v4580_v34 = vld [vmem:[#allocation7 + $0x304] ss:$16 sps:$4 sm:$0xff]  }
 0x164   :  { %3054 = vmatpush1.bf16.msra.mxu1 %v4497_v35  ;;  %v4583_v35 = vld [vmem:[#allocation7 + $0x30c] ss:$16 sps:$4 sm:$0xff]  }
 0x165   :  { %3055 = vmatprep.subr.bf16.mxu1 %v4505_v36  ;;  %v4578_v36 = vld [vmem:[#allocation7 + $0x300] ss:$16 sps:$4 sm:$0xff]  }
 0x168   :  { %3056 = vmatpush1.bf16.msra.mxu1 %v4503_v37  ;;  %v4581_v37 = vld [vmem:[#allocation7 + $0x308] ss:$16 sps:$4 sm:$0xff]  }
 0x169   :  { %3057 = vmatprep.subr.bf16.mxu1 %v4511_v38  ;;  %v4586_v38 = vld [vmem:[#allocation7 + $0x324] ss:$16 sps:$4 sm:$0xff]  }
 0x16c   :  { %3058 = vmatpush1.bf16.msra.mxu1 %v4509_v41  ;;  %v4589_v41 = vld [vmem:[#allocation7 + $0x32c] ss:$16 sps:$4 sm:$0xff]  }
 0x16d   :  { %3059 = vmatprep.subr.bf16.mxu1 %v4517_v42  ;;  %v4584_v42 = vld [vmem:[#allocation7 + $0x320] ss:$16 sps:$4 sm:$0xff]  }
 0x170   :  { %3060 = vmatpush1.bf16.msra.mxu1 %v4515_v43  ;;  %v4587_v43 = vld [vmem:[#allocation7 + $0x328] ss:$16 sps:$4 sm:$0xff]  }
 0x171   :  { %3061 = vmatprep.subr.bf16.mxu1 %v4523_v44  ;;  %v4592_v44 = vld [vmem:[#allocation7 + $0x344] ss:$16 sps:$4 sm:$0xff]  }
 0x174   :  { %3062 = vmatpush1.bf16.msra.mxu1 %v4521_v45  ;;  %v4595_v45 = vld [vmem:[#allocation7 + $0x34c] ss:$16 sps:$4 sm:$0xff]  }
 0x175   :  { %3063 = vmatprep.subr.bf16.mxu1 %v4529_v46  ;;  %v4590_v46 = vld [vmem:[#allocation7 + $0x340] ss:$16 sps:$4 sm:$0xff]  }
 0x178   :  { %3064 = vmatpush1.bf16.msra.mxu1 %v4527_v47  ;;  %v4593_v47 = vld [vmem:[#allocation7 + $0x348] ss:$16 sps:$4 sm:$0xff]  }
 0x179   :  { %3074 = vmatprep.subr.bf16.mxu1 %v4535_v48  ;;  %v4598_v48 = vld [vmem:[#allocation7 + $0x364] ss:$16 sps:$4 sm:$0xff]  }
 0x18e   :  { %v1165_v57 = vpop.f32.mrb[0].mxu1  ;;  %v5318_v39 = vpop.f32.mrb[0].mxu0 }
 0x18f   :  { %v1166_v31 = vadd.f32 %v1165_v57, %v454_v55  ;;  %v1167_v32 = vpop.f32.mrb[1].mxu1  ;;  %v5320_v40 = vpop.f32.mrb[1].mxu0  ;;  %v4596_v55 = vld [vmem:[#allocation7 + $0x360] ss:$16 sps:$4 sm:$0xff]   ;;  %v4604_v57 = vld [vmem:[#allocation7 + $0x384] ss:$16 sps:$4 sm:$0xff]  }
 0x190   :  { %v1168_v58 = vadd.f32 %v1167_v32, %v458_v56  ;;  %v1169_v59 = vpop.f32.mrb[2].mxu1  ;;  %v1251_v60 = vpop.f32.mrb[2].mxu0  ;;  %v4599_v56 = vld [vmem:[#allocation7 + $0x368] ss:$16 sps:$4 sm:$0xff]   ;;  %v4602_v32 = vld [vmem:[#allocation7 + $0x380] ss:$16 sps:$4 sm:$0xff]  }
 0x191   :  { %v1295_v61 = vmax.f32 %v1166_v31, 0.0  ;;  %v1170_v62 = vpop.f32.mrb[3].mxu1  ;;  %v1252_v63 = vpop.f32.mrb[3].mxu0  ;;  %v4607_v31 = vld [vmem:[#allocation7 + $0x38c] ss:$16 sps:$4 sm:$0xff]  }
 0x192   :  { %v1296_v0 = vmax.f32 %v1168_v58, 0.0  ;;  %v4605_v58 = vld [vmem:[#allocation7 + $0x388] ss:$16 sps:$4 sm:$0xff]   ;;  %v4610_v59 = vld [vmem:[#allocation7 + $0x3a4] ss:$16 sps:$4 sm:$0xff]   ;;  %v461_v62 = vsub.s32 2, %v5301_v20 }
 0x193   :  { %v1303_v4 = vpack.c.bf16 %v1295_v61, %v1295_v61  ;;  %v4613_v60 = vld [vmem:[#allocation7 + $0x3ac] ss:$16 sps:$4 sm:$0xff]   ;;  %v473_v61 = vsub.s32 5, %v5301_v20  ;;  %v4608_v63 = vld [vmem:[#allocation7 + $0x3a0] ss:$16 sps:$4 sm:$0xff]  }
 0x194   :  { %v1304_v1 = vpack.c.bf16 %v1296_v0, %v1296_v0  ;;  %v4611_v0 = vld [vmem:[#allocation7 + $0x3a8] ss:$16 sps:$4 sm:$0xff]  }
 0x196   :  { %2901 = vmatprep.mubr.bf16.mxu0 %v1304_v1  ;;  %3065 = vmatprep.mubr.bf16.mxu1 %v1304_v1  ;;  %v465_v1 = vsub.s32 3, %v5301_v20 }
 0x197   :  { %2902 = vmatmul.mubr.bf16.vlgmr.msra.gmra.mrb[4].mxu0 %v1303_v4  ;;  %3066 = vmatmul.mubr.bf16.vlgmr.msra.gmra.mrb[12].mxu1 %v1303_v4  ;;  %v474_v4 = vrot.slane %v5309_v53, %v473_v61  ;;  %v4668_v61 = vld [vmem:[#allocation7 + $0x4e0] ss:$16 sps:$4 sm:$0xff]  }
 0x198   :  { %2911 = vmatpush1.bf16.msra.mxu0 %v4530_v2  ;;  %3075 = vmatpush1.bf16.msra.mxu1 %v4533_v3  ;;  %v4616_v2 = vld [vmem:[#allocation7 + $0x3c4] ss:$16 sps:$4 sm:$0xff]   ;;  %v4619_v3 = vld [vmem:[#allocation7 + $0x3cc] ss:$16 sps:$4 sm:$0xff]  }
 0x199   :  { %2912 = vmatprep.subr.bf16.mxu0 %v4538_v5  ;;  %3076 = vmatprep.subr.bf16.mxu1 %v4541_v7  ;;  %v462_v5 = vrot.slane %v5309_v53, %v461_v62  ;;  %v466_v7 = vrot.slane %v5309_v53, %v465_v1 }
 0x19c   :  { %2913 = vmatpush1.bf16.msra.mxu0 %v4536_v8  ;;  %3077 = vmatpush1.bf16.msra.mxu1 %v4539_v9  ;;  %v4614_v8 = vld [vmem:[#allocation7 + $0x3c0] ss:$16 sps:$4 sm:$0xff]   ;;  %v4617_v9 = vld [vmem:[#allocation7 + $0x3c8] ss:$16 sps:$4 sm:$0xff]  }
 0x19d   :  { %2914 = vmatprep.subr.bf16.mxu0 %v4544_v10  ;;  %3078 = vmatprep.subr.bf16.mxu1 %v4547_v11  ;;  %v4622_v10 = vld [vmem:[#allocation7 + $0x3e4] ss:$16 sps:$4 sm:$0xff]   ;;  %v4625_v11 = vld [vmem:[#allocation7 + $0x3ec] ss:$16 sps:$4 sm:$0xff]  }
 0x1a0   :  { %2915 = vmatpush1.bf16.msra.mxu0 %v4542_v12  ;;  %3079 = vmatpush1.bf16.msra.mxu1 %v4545_v13  ;;  %v1250_v13 = vadd.f32 %v5320_v40, %v474_v4  ;;  %v4626_v40 = vld [vmem:[#allocation7 + $0x400] ss:$16 sps:$4 sm:$0xff]   ;;  %v4677_v4 = vld [vmem:[#allocation7 + $0x508] ss:$16 sps:$4 sm:$0xff]  }
 0x1a1   :  { %2916 = vmatprep.subr.bf16.mxu0 %v4550_v14  ;;  %3080 = vmatprep.subr.bf16.mxu1 %v4553_v15 }
 0x1a4   :  { %2917 = vmatpush1.bf16.msra.mxu0 %v4548_v16  ;;  %3081 = vmatpush1.bf16.msra.mxu1 %v4551_v17 }
 0x1a5   :  { %2918 = vmatprep.subr.bf16.mxu0 %v4556_v18  ;;  %3082 = vmatprep.subr.bf16.mxu1 %v4559_v25  ;;  %v4620_v18 = vld [vmem:[#allocation7 + $0x3e0] ss:$16 sps:$4 sm:$0xff]   ;;  %v4623_v25 = vld [vmem:[#allocation7 + $0x3e8] ss:$16 sps:$4 sm:$0xff]  }
 0x1a8   :  { %2919 = vmatpush1.bf16.msra.mxu0 %v4554_v19  ;;  %3083 = vmatpush1.bf16.msra.mxu1 %v4557_v21 }
 0x1a9   :  { %2920 = vmatprep.subr.bf16.mxu0 %v4562_v6  ;;  %3084 = vmatprep.subr.bf16.mxu1 %v4565_v22  ;;  %v4628_v6 = vld [vmem:[#allocation7 + $0x404] ss:$16 sps:$4 sm:$0xff]   ;;  %v4631_v22 = vld [vmem:[#allocation7 + $0x40c] ss:$16 sps:$4 sm:$0xff]  }
 0x1ac   :  { %2921 = vmatpush1.bf16.msra.mxu0 %v4560_v23  ;;  %3085 = vmatpush1.bf16.msra.mxu1 %v4563_v24  ;;  %v1300_v24 = vmax.f32 %v1250_v13, 0.0  ;;  %v4689_v13 = vld [vmem:[#allocation7 + $0x548] ss:$16 sps:$4 sm:$0xff]  }
 0x1ad   :  { %2922 = vmatprep.subr.bf16.mxu0 %v4568_v51  ;;  %3086 = vmatprep.subr.bf16.mxu1 %v4571_v26 }
 0x1b0   :  { %2923 = vmatpush1.bf16.msra.mxu0 %v4566_v27  ;;  %3087 = vmatpush1.bf16.msra.mxu1 %v4569_v28  ;;  %v4629_v27 = vld [vmem:[#allocation7 + $0x408] ss:$16 sps:$4 sm:$0xff]   ;;  %v4634_v28 = vld [vmem:[#allocation7 + $0x424] ss:$16 sps:$4 sm:$0xff]  }
 0x1b1   :  { %2924 = vmatprep.subr.bf16.mxu0 %v4574_v29  ;;  %3088 = vmatprep.subr.bf16.mxu1 %v4577_v30  ;;  %v4637_v29 = vld [vmem:[#allocation7 + $0x42c] ss:$16 sps:$4 sm:$0xff]   ;;  %v1308_v30 = vpack.c.bf16 %v1300_v24, %v1300_v24 }
 0x1b4   :  { %2925 = vmatpush1.bf16.msra.mxu0 %v4572_v33  ;;  %3089 = vmatpush1.bf16.msra.mxu1 %v4575_v49  ;;  %v4632_v33 = vld [vmem:[#allocation7 + $0x420] ss:$16 sps:$4 sm:$0xff]   ;;  %v4635_v49 = vld [vmem:[#allocation7 + $0x428] ss:$16 sps:$4 sm:$0xff]  }
 0x1b5   :  { %2926 = vmatprep.subr.bf16.mxu0 %v4580_v34  ;;  %3090 = vmatprep.subr.bf16.mxu1 %v4583_v35  ;;  %v4640_v34 = vld [vmem:[#allocation7 + $0x444] ss:$16 sps:$4 sm:$0xff]   ;;  %v4643_v35 = vld [vmem:[#allocation7 + $0x44c] ss:$16 sps:$4 sm:$0xff]  }
 0x1b8   :  { %2927 = vmatpush1.bf16.msra.mxu0 %v4578_v36  ;;  %3091 = vmatpush1.bf16.msra.mxu1 %v4581_v37  ;;  %v4638_v36 = vld [vmem:[#allocation7 + $0x440] ss:$16 sps:$4 sm:$0xff]   ;;  %v4641_v37 = vld [vmem:[#allocation7 + $0x448] ss:$16 sps:$4 sm:$0xff]  }
 0x1b9   :  { %2928 = vmatprep.subr.bf16.mxu0 %v4586_v38  ;;  %3092 = vmatprep.subr.bf16.mxu1 %v4589_v41  ;;  %v4646_v38 = vld [vmem:[#allocation7 + $0x464] ss:$16 sps:$4 sm:$0xff]   ;;  %v4649_v41 = vld [vmem:[#allocation7 + $0x46c] ss:$16 sps:$4 sm:$0xff]  }
 0x1bc   :  { %2929 = vmatpush1.bf16.msra.mxu0 %v4584_v42  ;;  %3093 = vmatpush1.bf16.msra.mxu1 %v4587_v43  ;;  %v4644_v42 = vld [vmem:[#allocation7 + $0x460] ss:$16 sps:$4 sm:$0xff]   ;;  %v4647_v43 = vld [vmem:[#allocation7 + $0x468] ss:$16 sps:$4 sm:$0xff]  }
 0x1bd   :  { %2930 = vmatprep.subr.bf16.mxu0 %v4592_v44  ;;  %3094 = vmatprep.subr.bf16.mxu1 %v4595_v45  ;;  %v4652_v44 = vld [vmem:[#allocation7 + $0x484] ss:$16 sps:$4 sm:$0xff]   ;;  %v4655_v45 = vld [vmem:[#allocation7 + $0x48c] ss:$16 sps:$4 sm:$0xff]  }
 0x1c0   :  { %2931 = vmatpush1.bf16.msra.mxu0 %v4590_v46  ;;  %3095 = vmatpush1.bf16.msra.mxu1 %v4593_v47  ;;  %v4650_v46 = vld [vmem:[#allocation7 + $0x480] ss:$16 sps:$4 sm:$0xff]   ;;  %v4653_v47 = vld [vmem:[#allocation7 + $0x488] ss:$16 sps:$4 sm:$0xff]  }
 0x1c1   :  { %2932 = vmatprep.subr.bf16.mxu0 %v4598_v48  ;;  %3096 = vmatprep.subr.bf16.mxu1 %v4601_v50  ;;  %v4658_v48 = vld [vmem:[#allocation7 + $0x4a4] ss:$16 sps:$4 sm:$0xff]   ;;  %v4661_v50 = vld [vmem:[#allocation7 + $0x4ac] ss:$16 sps:$4 sm:$0xff]  }
 0x1c4   :  { %2933 = vmatpush1.bf16.msra.mxu0 %v4596_v55  ;;  %3097 = vmatpush1.bf16.msra.mxu1 %v4599_v56  ;;  %v4656_v55 = vld [vmem:[#allocation7 + $0x4a0] ss:$16 sps:$4 sm:$0xff]   ;;  %v4659_v56 = vld [vmem:[#allocation7 + $0x4a8] ss:$16 sps:$4 sm:$0xff]  }
 0x1c5   :  { %2934 = vmatprep.subr.bf16.mxu0 %v4604_v57  ;;  %3098 = vmatprep.subr.bf16.mxu1 %v4607_v31  ;;  %v4664_v57 = vld [vmem:[#allocation7 + $0x4c4] ss:$16 sps:$4 sm:$0xff]   ;;  %v4667_v31 = vld [vmem:[#allocation7 + $0x4cc] ss:$16 sps:$4 sm:$0xff]  }
 0x1c8   :  { %2935 = vmatpush1.bf16.msra.mxu0 %v4602_v32  ;;  %3099 = vmatpush1.bf16.msra.mxu1 %v4605_v58  ;;  %v4662_v32 = vld [vmem:[#allocation7 + $0x4c0] ss:$16 sps:$4 sm:$0xff]   ;;  %v4665_v58 = vld [vmem:[#allocation7 + $0x4c8] ss:$16 sps:$4 sm:$0xff]  }
 0x1c9   :  { %2936 = vmatprep.subr.bf16.mxu0 %v4610_v59  ;;  %3100 = vmatprep.subr.bf16.mxu1 %v4613_v60  ;;  %v4670_v59 = vld [vmem:[#allocation7 + $0x4e4] ss:$16 sps:$4 sm:$0xff]   ;;  %v4673_v60 = vld [vmem:[#allocation7 + $0x4ec] ss:$16 sps:$4 sm:$0xff]  }
 0x1cc   :  { %2937 = vmatpush1.bf16.msra.mxu0 %v4608_v63  ;;  %3101 = vmatpush1.bf16.msra.mxu1 %v4611_v0  ;;  %v4671_v63 = vld [vmem:[#allocation7 + $0x4e8] ss:$16 sps:$4 sm:$0xff]   ;;  %v4676_v0 = vld [vmem:[#allocation7 + $0x504] ss:$16 sps:$4 sm:$0xff]  }
 0x1cd   :  { %2938 = vmatprep.subr.bf16.mxu0 %v4616_v2  ;;  %3102 = vmatprep.subr.bf16.mxu1 %v4619_v3  ;;  %v4679_v2 = vld [vmem:[#allocation7 + $0x50c] ss:$16 sps:$4 sm:$0xff]   ;;  %v4674_v3 = vld [vmem:[#allocation7 + $0x500] ss:$16 sps:$4 sm:$0xff]  }
 0x1ce   :  { %v1206_v12 = vpop.f32.mrb[4].mxu1 }
 0x1cf   :  { %v1207_v14 = vadd.f32 %v1206_v12, %v462_v5  ;;  %v1208_v15 = vpop.f32.mrb[5].mxu1  ;;  %v4682_v5 = vld [vmem:[#allocation7 + $0x524] ss:$16 sps:$4 sm:$0xff]   ;;  %v4686_v12 = vld [vmem:[#allocation7 + $0x540] ss:$16 sps:$4 sm:$0xff]  }
 0x1d0   :  { %v1209_v16 = vadd.f32 %v1208_v15, %v466_v7  ;;  %v1210_v17 = vpop.f32.mrb[6].mxu1  ;;  %2939 = vmatpush1.bf16.msra.mxu0 %v4614_v8  ;;  %3103 = vmatpush1.bf16.msra.mxu1 %v4617_v9  ;;  %v4685_v7 = vld [vmem:[#allocation7 + $0x52c] ss:$16 sps:$4 sm:$0xff]   ;;  %v4680_v8 = vld [vmem:[#allocation7 + $0x520] ss:$16 sps:$4 sm:$0xff]  }
 0x1d1   :  { %v1297_v19 = vmax.f32 %v1207_v14, 0.0  ;;  %v1211_v21 = vpop.f32.mrb[7].mxu1  ;;  %2940 = vmatprep.subr.bf16.mxu0 %v4622_v10  ;;  %3104 = vmatprep.subr.bf16.mxu1 %v4625_v11  ;;  %v4683_v9 = vld [vmem:[#allocation7 + $0x528] ss:$16 sps:$4 sm:$0xff]   ;;  %v4688_v10 = vld [vmem:[#allocation7 + $0x544] ss:$16 sps:$4 sm:$0xff]  }
 0x1d2   :  { %v1298_v23 = vmax.f32 %v1209_v16, 0.0  ;;  %v4691_v11 = vld [vmem:[#allocation7 + $0x54c] ss:$16 sps:$4 sm:$0xff]   ;;  %v4694_v14 = vld [vmem:[#allocation7 + $0x564] ss:$16 sps:$4 sm:$0xff]  }
 0x1d3   :  { %v1305_v51 = vpack.c.bf16 %v1297_v19, %v1297_v19  ;;  %v4697_v15 = vld [vmem:[#allocation7 + $0x56c] ss:$16 sps:$4 sm:$0xff]   ;;  %v4692_v16 = vld [vmem:[#allocation7 + $0x560] ss:$16 sps:$4 sm:$0xff]   ;;  %v4695_v17 = vld [vmem:[#allocation7 + $0x568] ss:$16 sps:$4 sm:$0xff]  }
 0x1d4   :  { %v1306_v26 = vpack.c.bf16 %v1298_v23, %v1298_v23  ;;  %2941 = vmatpush1.bf16.msra.mxu0 %v4620_v18  ;;  %3105 = vmatpush1.bf16.msra.mxu1 %v4623_v25  ;;  %v4700_v18 = vld [vmem:[#allocation7 + $0x584] ss:$16 sps:$4 sm:$0xff]   ;;  %v4703_v25 = vld [vmem:[#allocation7 + $0x58c] ss:$16 sps:$4 sm:$0xff]   ;;  %v469_v19 = vsub.s32 4, %v5301_v20 }
 0x1d5   :  { %2951 = vmatprep.subr.bf16.mxu0 %v4628_v6  ;;  %3115 = vmatprep.subr.bf16.mxu1 %v4631_v22  ;;  %v4698_v21 = vld [vmem:[#allocation7 + $0x580] ss:$16 sps:$4 sm:$0xff]   ;;  %v4701_v6 = vld [vmem:[#allocation7 + $0x588] ss:$16 sps:$4 sm:$0xff]   ;;  %v4706_v22 = vld [vmem:[#allocation7 + $0x5a4] ss:$16 sps:$4 sm:$0xff]  }
 0x1d6   :  { %2942 = vmatprep.mubr.bf16.mxu0 %v1306_v26  ;;  %3106 = vmatprep.mubr.bf16.mxu1 %v1306_v26  ;;  %v4709_v23 = vld [vmem:[#allocation7 + $0x5ac] ss:$16 sps:$4 sm:$0xff]   ;;  %v470_v24 = vrot.slane %v5309_v53, %v469_v19  ;;  %v4707_v26 = vld [vmem:[#allocation7 + $0x5a8] ss:$16 sps:$4 sm:$0xff]   ;;  %v4764_v19 = vld [vmem:[#allocation7 + $0x6e0] ss:$16 sps:$4 sm:$0xff]  }
 0x1d7   :  { %2943 = vmatmul.mubr.bf16.vlgmr.msra.gmra.mrb[4].mxu0 %v1305_v51  ;;  %3107 = vmatmul.mubr.bf16.vlgmr.msra.gmra.mrb[12].mxu1 %v1305_v51  ;;  %v4704_v51 = vld [vmem:[#allocation7 + $0x5a0] ss:$16 sps:$4 sm:$0xff]  }
 0x1d8   :  { %2952 = vmatpush1.bf16.msra.mxu0 %v4626_v40  ;;  %3116 = vmatpush1.bf16.msra.mxu1 %v4629_v27  ;;  %v481_v40 = vsub.s32 7, %v5301_v20  ;;  %v4712_v27 = vld [vmem:[#allocation7 + $0x5c4] ss:$16 sps:$4 sm:$0xff]  }
 0x1d9   :  { %2953 = vmatprep.subr.bf16.mxu0 %v4634_v28  ;;  %3117 = vmatprep.subr.bf16.mxu1 %v4637_v29  ;;  %v4715_v28 = vld [vmem:[#allocation7 + $0x5cc] ss:$16 sps:$4 sm:$0xff]   ;;  %v1248_v29 = vadd.f32 %v5318_v39, %v470_v24  ;;  %v4773_v24 = vld [vmem:[#allocation7 + $0x708] ss:$16 sps:$4 sm:$0xff]  }
 0x1da   :  { %2983 = vmatprep.mubr.bf16.mxu0 %v1308_v30  ;;  %3147 = vmatprep.mubr.bf16.mxu1 %v1308_v30  ;;  %v4710_v30 = vld [vmem:[#allocation7 + $0x5c0] ss:$16 sps:$4 sm:$0xff]  }
 0x1dc   :  { %2954 = vmatpush1.bf16.msra.mxu0 %v4632_v33  ;;  %3118 = vmatpush1.bf16.msra.mxu1 %v4635_v49  ;;  %v4713_v33 = vld [vmem:[#allocation7 + $0x5c8] ss:$16 sps:$4 sm:$0xff]   ;;  %v482_v49 = vrot.slane %v5309_v53, %v481_v40  ;;  %v4776_v40 = vld [vmem:[#allocation7 + $0x720] ss:$16 sps:$4 sm:$0xff]  }
 0x1dd   :  { %2955 = vmatprep.subr.bf16.mxu0 %v4640_v34  ;;  %3119 = vmatprep.subr.bf16.mxu1 %v4643_v35  ;;  %v4718_v34 = vld [vmem:[#allocation7 + $0x5e4] ss:$16 sps:$4 sm:$0xff]   ;;  %v4721_v35 = vld [vmem:[#allocation7 + $0x5ec] ss:$16 sps:$4 sm:$0xff]  }
 0x1e0   :  { %2956 = vmatpush1.bf16.msra.mxu0 %v4638_v36  ;;  %3120 = vmatpush1.bf16.msra.mxu1 %v4641_v37  ;;  %v1299_v37 = vmax.f32 %v1248_v29, 0.0  ;;  %v4787_v29 = vld [vmem:[#allocation7 + $0x74c] ss:$16 sps:$4 sm:$0xff]  }
 0x1e1   :  { %2957 = vmatprep.subr.bf16.mxu0 %v4646_v38  ;;  %3121 = vmatprep.subr.bf16.mxu1 %v4649_v41  ;;  %v4716_v41 = vld [vmem:[#allocation7 + $0x5e0] ss:$16 sps:$4 sm:$0xff]  }
 0x1e4   :  { %2958 = vmatpush1.bf16.msra.mxu0 %v4644_v42  ;;  %3122 = vmatpush1.bf16.msra.mxu1 %v4647_v43  ;;  %v4719_v42 = vld [vmem:[#allocation7 + $0x5e8] ss:$16 sps:$4 sm:$0xff]  }
 0x1e5   :  { %2959 = vmatprep.subr.bf16.mxu0 %v4652_v44  ;;  %3123 = vmatprep.subr.bf16.mxu1 %v4655_v45  ;;  %v4724_v44 = vld [vmem:[#allocation7 + $0x604] ss:$16 sps:$4 sm:$0xff]   ;;  %v4727_v45 = vld [vmem:[#allocation7 + $0x60c] ss:$16 sps:$4 sm:$0xff]  }
 0x1e8   :  { %2960 = vmatpush1.bf16.msra.mxu0 %v4650_v46  ;;  %3124 = vmatpush1.bf16.msra.mxu1 %v4653_v47 }
 0x1e9   :  { %2961 = vmatprep.subr.bf16.mxu0 %v4658_v48  ;;  %3125 = vmatprep.subr.bf16.mxu1 %v4661_v50  ;;  %v1307_v48 = vpack.c.bf16 %v1299_v37, %v1299_v37  ;;  %v4722_v50 = vld [vmem:[#allocation7 + $0x600] ss:$16 sps:$4 sm:$0xff]   ;;  %v4791_v37 = vld [vmem:[#allocation7 + $0x768] ss:$16 sps:$4 sm:$0xff]  }
 0x1ec   :  { %2962 = vmatpush1.bf16.msra.mxu0 %v4656_v55  ;;  %3126 = vmatpush1.bf16.msra.mxu1 %v4659_v56  ;;  %v4725_v55 = vld [vmem:[#allocation7 + $0x608] ss:$16 sps:$4 sm:$0xff]   ;;  %v4730_v56 = vld [vmem:[#allocation7 + $0x624] ss:$16 sps:$4 sm:$0xff]  }
 0x1ed   :  { %2963 = vmatprep.subr.bf16.mxu0 %v4664_v57  ;;  %3127 = vmatprep.subr.bf16.mxu1 %v4667_v31  ;;  %v4733_v57 = vld [vmem:[#allocation7 + $0x62c] ss:$16 sps:$4 sm:$0xff]  }
 0x1f0   :  { %2964 = vmatpush1.bf16.msra.mxu0 %v4662_v32  ;;  %3128 = vmatpush1.bf16.msra.mxu1 %v4665_v58  ;;  %v4728_v32 = vld [vmem:[#allocation7 + $0x620] ss:$16 sps:$4 sm:$0xff]   ;;  %v4731_v58 = vld [vmem:[#allocation7 + $0x628] ss:$16 sps:$4 sm:$0xff]  }
 0x1f1   :  { %2965 = vmatprep.subr.bf16.mxu0 %v4670_v59  ;;  %3129 = vmatprep.subr.bf16.mxu1 %v4673_v60  ;;  %v4736_v59 = vld [vmem:[#allocation7 + $0x644] ss:$16 sps:$4 sm:$0xff]   ;;  %v4739_v60 = vld [vmem:[#allocation7 + $0x64c] ss:$16 sps:$4 sm:$0xff]  }
 0x1f4   :  { %2966 = vmatpush1.bf16.msra.mxu0 %v4668_v61  ;;  %3130 = vmatpush1.bf16.msra.mxu1 %v4671_v63  ;;  %v4734_v61 = vld [vmem:[#allocation7 + $0x640] ss:$16 sps:$4 sm:$0xff]   ;;  %v4737_v63 = vld [vmem:[#allocation7 + $0x648] ss:$16 sps:$4 sm:$0xff]  }
 0x1f5   :  { %2967 = vmatprep.subr.bf16.mxu0 %v4676_v0  ;;  %3131 = vmatprep.subr.bf16.mxu1 %v4679_v2  ;;  %v4742_v0 = vld [vmem:[#allocation7 + $0x664] ss:$16 sps:$4 sm:$0xff]   ;;  %v4745_v2 = vld [vmem:[#allocation7 + $0x66c] ss:$16 sps:$4 sm:$0xff]  }
 0x1f8   :  { %2968 = vmatpush1.bf16.msra.mxu0 %v4674_v3  ;;  %3132 = vmatpush1.bf16.msra.mxu1 %v4677_v4  ;;  %v4740_v3 = vld [vmem:[#allocation7 + $0x660] ss:$16 sps:$4 sm:$0xff]   ;;  %v4743_v4 = vld [vmem:[#allocation7 + $0x668] ss:$16 sps:$4 sm:$0xff]  }
 0x1f9   :  { %2969 = vmatprep.subr.bf16.mxu0 %v4682_v5  ;;  %3133 = vmatprep.subr.bf16.mxu1 %v4685_v7  ;;  %v4748_v5 = vld [vmem:[#allocation7 + $0x684] ss:$16 sps:$4 sm:$0xff]   ;;  %v4751_v7 = vld [vmem:[#allocation7 + $0x68c] ss:$16 sps:$4 sm:$0xff]  }
 0x1fc   :  { %2970 = vmatpush1.bf16.msra.mxu0 %v4680_v8  ;;  %3134 = vmatpush1.bf16.msra.mxu1 %v4683_v9  ;;  %v4746_v8 = vld [vmem:[#allocation7 + $0x680] ss:$16 sps:$4 sm:$0xff]   ;;  %v4749_v9 = vld [vmem:[#allocation7 + $0x688] ss:$16 sps:$4 sm:$0xff]  }
 0x1fd   :  { %2971 = vmatprep.subr.bf16.mxu0 %v4688_v10  ;;  %3135 = vmatprep.subr.bf16.mxu1 %v4691_v11  ;;  %v4754_v10 = vld [vmem:[#allocation7 + $0x6a4] ss:$16 sps:$4 sm:$0xff]   ;;  %v4757_v11 = vld [vmem:[#allocation7 + $0x6ac] ss:$16 sps:$4 sm:$0xff]  }
 0x200   :  { %2972 = vmatpush1.bf16.msra.mxu0 %v4686_v12  ;;  %3136 = vmatpush1.bf16.msra.mxu1 %v4689_v13  ;;  %v4752_v12 = vld [vmem:[#allocation7 + $0x6a0] ss:$16 sps:$4 sm:$0xff]   ;;  %v4755_v13 = vld [vmem:[#allocation7 + $0x6a8] ss:$16 sps:$4 sm:$0xff]  }
 0x201   :  { %2973 = vmatprep.subr.bf16.mxu0 %v4694_v14  ;;  %3137 = vmatprep.subr.bf16.mxu1 %v4697_v15  ;;  %v4760_v14 = vld [vmem:[#allocation7 + $0x6c4] ss:$16 sps:$4 sm:$0xff]   ;;  %v4763_v15 = vld [vmem:[#allocation7 + $0x6cc] ss:$16 sps:$4 sm:$0xff]  }
 0x204   :  { %2974 = vmatpush1.bf16.msra.mxu0 %v4692_v16  ;;  %3138 = vmatpush1.bf16.msra.mxu1 %v4695_v17  ;;  %v4758_v16 = vld [vmem:[#allocation7 + $0x6c0] ss:$16 sps:$4 sm:$0xff]   ;;  %v4761_v17 = vld [vmem:[#allocation7 + $0x6c8] ss:$16 sps:$4 sm:$0xff]  }
 0x205   :  { %2975 = vmatprep.subr.bf16.mxu0 %v4700_v18  ;;  %3139 = vmatprep.subr.bf16.mxu1 %v4703_v25  ;;  %v4766_v18 = vld [vmem:[#allocation7 + $0x6e4] ss:$16 sps:$4 sm:$0xff]   ;;  %v4769_v25 = vld [vmem:[#allocation7 + $0x6ec] ss:$16 sps:$4 sm:$0xff]  }
 0x208   :  { %2976 = vmatpush1.bf16.msra.mxu0 %v4698_v21  ;;  %3140 = vmatpush1.bf16.msra.mxu1 %v4701_v6  ;;  %v4767_v21 = vld [vmem:[#allocation7 + $0x6e8] ss:$16 sps:$4 sm:$0xff]   ;;  %v4772_v6 = vld [vmem:[#allocation7 + $0x704] ss:$16 sps:$4 sm:$0xff]  }
 0x209   :  { %2977 = vmatprep.subr.bf16.mxu0 %v4706_v22  ;;  %3141 = vmatprep.subr.bf16.mxu1 %v4709_v23  ;;  %v4775_v22 = vld [vmem:[#allocation7 + $0x70c] ss:$16 sps:$4 sm:$0xff]   ;;  %v4770_v23 = vld [vmem:[#allocation7 + $0x700] ss:$16 sps:$4 sm:$0xff]  }
 0x20c   :  { %2978 = vmatpush1.bf16.msra.mxu0 %v4704_v51  ;;  %3142 = vmatpush1.bf16.msra.mxu1 %v4707_v26  ;;  %v4778_v51 = vld [vmem:[#allocation7 + $0x724] ss:$16 sps:$4 sm:$0xff]   ;;  %v4781_v26 = vld [vmem:[#allocation7 + $0x72c] ss:$16 sps:$4 sm:$0xff]  }
 0x20d   :  { %2979 = vmatprep.subr.bf16.mxu0 %v4712_v27  ;;  %3143 = vmatprep.subr.bf16.mxu1 %v4715_v28  ;;  %v4779_v27 = vld [vmem:[#allocation7 + $0x728] ss:$16 sps:$4 sm:$0xff]   ;;  %v4784_v28 = vld [vmem:[#allocation7 + $0x744] ss:$16 sps:$4 sm:$0xff]  }
 0x20e   :  { %v5338_v36 = vpop.f32.mrb[8].mxu1 }
 0x20f   :  { %v1290_v38 = vpop.f32.mrb[9].mxu1 }
 0x210   :  { %2980 = vmatpush1.bf16.msra.mxu0 %v4710_v30  ;;  %3144 = vmatpush1.bf16.msra.mxu1 %v4713_v33  ;;  %v1291_v43 = vadd.f32 %v1290_v38, %v482_v49  ;;  %v1292_v39 = vpop.f32.mrb[10].mxu1  ;;  %v4782_v30 = vld [vmem:[#allocation7 + $0x740] ss:$16 sps:$4 sm:$0xff]   ;;  %v4785_v33 = vld [vmem:[#allocation7 + $0x748] ss:$16 sps:$4 sm:$0xff]  }
 0x211   :  { %2981 = vmatprep.subr.bf16.mxu0 %v4718_v34  ;;  %3145 = vmatprep.subr.bf16.mxu1 %v4721_v35  ;;  %v1293_v46 = vpop.f32.mrb[11].mxu1  ;;  %v4790_v49 = vld [vmem:[#allocation7 + $0x764] ss:$16 sps:$4 sm:$0xff]   ;;  %v4793_v34 = vld [vmem:[#allocation7 + $0x76c] ss:$16 sps:$4 sm:$0xff]   ;;  %v477_v39 = vsub.s32 6, %v5301_v20 }
 0x212   :  { %v1302_v47 = vmax.f32 %v1291_v43, 0.0  ;;  %v4788_v35 = vld [vmem:[#allocation7 + $0x760] ss:$16 sps:$4 sm:$0xff]   ;;  %v4796_v38 = vld [vmem:[#allocation7 + $0x784] ss:$16 sps:$4 sm:$0xff]   ;;  %v4928_v20 = vld [vmem:[#allocation10 + $0x78] sm:$0xff]  }
 0x213   :  { %v4797_v43 = vld [vmem:[#allocation7 + $0x788] ss:$16 sps:$4 sm:$0xff]   ;;  %v4800_v46 = vld [vmem:[#allocation7 + $0x7a0] ss:$16 sps:$4 sm:$0xff]  }
 0x214   :  { %2982 = vmatpush1.bf16.msra.mxu0 %v4716_v41  ;;  %3146 = vmatpush1.bf16.msra.mxu1 %v4719_v42  ;;  %v1310_v31 = vpack.c.bf16 %v1302_v47, %v1302_v47  ;;  %v4799_v41 = vld [vmem:[#allocation7 + $0x78c] ss:$16 sps:$4 sm:$0xff]   ;;  %v4794_v42 = vld [vmem:[#allocation7 + $0x780] ss:$16 sps:$4 sm:$0xff]   ;;  %v4803_v47 = vld [vmem:[#allocation7 + $0x7a8] ss:$16 sps:$4 sm:$0xff]  }
 0x215   :  { %2992 = vmatprep.subr.bf16.mxu0 %v4724_v44  ;;  %3156 = vmatprep.subr.bf16.mxu1 %v4727_v45  ;;  %v4802_v44 = vld [vmem:[#allocation7 + $0x7a4] ss:$16 sps:$4 sm:$0xff]   ;;  %v4805_v45 = vld [vmem:[#allocation7 + $0x7ac] ss:$16 sps:$4 sm:$0xff]  }
 0x217   :  { %2984 = vmatmul.mubr.bf16.vlgmr.msra.gmra.mrb[4].mxu0 %v1307_v48  ;;  %3148 = vmatmul.mubr.bf16.vlgmr.msra.gmra.mrb[12].mxu1 %v1307_v48  ;;  %v478_v48 = vrot.slane %v5309_v53, %v477_v39  ;;  %v4820_v53 = vld [vmem:[#allocation8 + $0x4] ss:$8 sps:$4 sm:$0xff]  }
 0x218   :  { %2993 = vmatpush1.bf16.msra.mxu0 %v4722_v50  ;;  %3157 = vmatpush1.bf16.msra.mxu1 %v4725_v55  ;;  %v4808_v50 = vld [vmem:[#allocation7 + $0x7c4] ss:$16 sps:$4 sm:$0xff]   ;;  %v4811_v55 = vld [vmem:[#allocation7 + $0x7cc] ss:$16 sps:$4 sm:$0xff]  }
 0x219   :  { %2994 = vmatprep.subr.bf16.mxu0 %v4730_v56  ;;  %3158 = vmatprep.subr.bf16.mxu1 %v4733_v57  ;;  %v4806_v56 = vld [vmem:[#allocation7 + $0x7c0] ss:$16 sps:$4 sm:$0xff]   ;;  %v4809_v57 = vld [vmem:[#allocation7 + $0x7c8] ss:$16 sps:$4 sm:$0xff]  }
 0x21a   :  { %3024 = vmatprep.mubr.bf16.mxu0 %v1310_v31  ;;  %3188 = vmatprep.mubr.bf16.mxu1 %v1310_v31  ;;  %v1289_v31 = vadd.f32 %v5338_v36, %v478_v48  ;;  %v4821_v36 = vld [vmem:[#allocation8 + $0x10] ss:$8 sps:$4 sm:$0xff]   ;;  %v4923_v39 = vld [vmem:[#allocation10 + $0x20] sm:$0xff]  }
 0x21c   :  { %2995 = vmatpush1.bf16.msra.mxu0 %v4728_v32  ;;  %3159 = vmatpush1.bf16.msra.mxu1 %v4731_v58  ;;  %v4814_v32 = vld [vmem:[#allocation7 + $0x7e4] ss:$16 sps:$4 sm:$0xff]   ;;  %v4817_v58 = vld [vmem:[#allocation7 + $0x7ec] ss:$16 sps:$4 sm:$0xff]  }
 0x21d   :  { %2996 = vmatprep.subr.bf16.mxu0 %v4736_v59  ;;  %3160 = vmatprep.subr.bf16.mxu1 %v4739_v60  ;;  %v4812_v59 = vld [vmem:[#allocation7 + $0x7e0] ss:$16 sps:$4 sm:$0xff]   ;;  %v4815_v60 = vld [vmem:[#allocation7 + $0x7e8] ss:$16 sps:$4 sm:$0xff]  }
 0x220   :  { %2997 = vmatpush1.bf16.msra.mxu0 %v4734_v61  ;;  %3161 = vmatpush1.bf16.msra.mxu1 %v4737_v63  ;;  %v1301_v61 = vmax.f32 %v1289_v31, 0.0  ;;  %v4818_v63 = vld [vmem:[#allocation8] ss:$8 sps:$4 sm:$0xff]  }
 0x221   :  { %2998 = vmatprep.subr.bf16.mxu0 %v4742_v0  ;;  %3162 = vmatprep.subr.bf16.mxu1 %v4745_v2  ;;  %v4823_v2 = vld [vmem:[#allocation8 + $0x14] ss:$8 sps:$4 sm:$0xff]  }
 0x222   :  { %v1309_v0 = vpack.c.bf16 %v1301_v61, %v1301_v61 }
 0x224   :  { %2999 = vmatpush1.bf16.msra.mxu0 %v4740_v3  ;;  %3163 = vmatpush1.bf16.msra.mxu1 %v4743_v4  ;;  %v4826_v3 = vld [vmem:[#allocation8 + $0x24] ss:$8 sps:$4 sm:$0xff]   ;;  %v4824_v4 = vld [vmem:[#allocation8 + $0x20] ss:$8 sps:$4 sm:$0xff]  }
 0x225   :  { %3000 = vmatprep.subr.bf16.mxu0 %v4748_v5  ;;  %3164 = vmatprep.subr.bf16.mxu1 %v4751_v7  ;;  %v4829_v5 = vld [vmem:[#allocation8 + $0x34] ss:$8 sps:$4 sm:$0xff]   ;;  %v4827_v7 = vld [vmem:[#allocation8 + $0x30] ss:$8 sps:$4 sm:$0xff]  }
 0x228   :  { %3001 = vmatpush1.bf16.msra.mxu0 %v4746_v8  ;;  %3165 = vmatpush1.bf16.msra.mxu1 %v4749_v9  ;;  %v4832_v8 = vld [vmem:[#allocation8 + $0x44] ss:$8 sps:$4 sm:$0xff]   ;;  %v4830_v9 = vld [vmem:[#allocation8 + $0x40] ss:$8 sps:$4 sm:$0xff]  }
 0x229   :  { %3002 = vmatprep.subr.bf16.mxu0 %v4754_v10  ;;  %3166 = vmatprep.subr.bf16.mxu1 %v4757_v11  ;;  %v4835_v10 = vld [vmem:[#allocation8 + $0x54] ss:$8 sps:$4 sm:$0xff]   ;;  %v4833_v11 = vld [vmem:[#allocation8 + $0x50] ss:$8 sps:$4 sm:$0xff]  }
 0x22c   :  { %3003 = vmatpush1.bf16.msra.mxu0 %v4752_v12  ;;  %3167 = vmatpush1.bf16.msra.mxu1 %v4755_v13  ;;  %v4838_v12 = vld [vmem:[#allocation8 + $0x64] ss:$8 sps:$4 sm:$0xff]   ;;  %v4836_v13 = vld [vmem:[#allocation8 + $0x60] ss:$8 sps:$4 sm:$0xff]  }
 0x22d   :  { %3004 = vmatprep.subr.bf16.mxu0 %v4760_v14  ;;  %3168 = vmatprep.subr.bf16.mxu1 %v4763_v15  ;;  %v4841_v14 = vld [vmem:[#allocation8 + $0x74] ss:$8 sps:$4 sm:$0xff]   ;;  %v4839_v15 = vld [vmem:[#allocation8 + $0x70] ss:$8 sps:$4 sm:$0xff]  }
 0x230   :  { %3005 = vmatpush1.bf16.msra.mxu0 %v4758_v16  ;;  %3169 = vmatpush1.bf16.msra.mxu1 %v4761_v17  ;;  %v4844_v16 = vld [vmem:[#allocation8 + $0x84] ss:$8 sps:$4 sm:$0xff]   ;;  %v4842_v17 = vld [vmem:[#allocation8 + $0x80] ss:$8 sps:$4 sm:$0xff]  }
 0x231   :  { %3006 = vmatprep.subr.bf16.mxu0 %v4766_v18  ;;  %3170 = vmatprep.subr.bf16.mxu1 %v4769_v25  ;;  %v4847_v18 = vld [vmem:[#allocation8 + $0x94] ss:$8 sps:$4 sm:$0xff]   ;;  %v4845_v25 = vld [vmem:[#allocation8 + $0x90] ss:$8 sps:$4 sm:$0xff]  }
 0x234   :  { %3007 = vmatpush1.bf16.msra.mxu0 %v4764_v19  ;;  %3171 = vmatpush1.bf16.msra.mxu1 %v4767_v21  ;;  %v4850_v19 = vld [vmem:[#allocation8 + $0xa4] ss:$8 sps:$4 sm:$0xff]   ;;  %v4848_v21 = vld [vmem:[#allocation8 + $0xa0] ss:$8 sps:$4 sm:$0xff]  }
 0x235   :  { %3008 = vmatprep.subr.bf16.mxu0 %v4772_v6  ;;  %3172 = vmatprep.subr.bf16.mxu1 %v4775_v22  ;;  %v4853_v6 = vld [vmem:[#allocation8 + $0xb4] ss:$8 sps:$4 sm:$0xff]   ;;  %v4851_v22 = vld [vmem:[#allocation8 + $0xb0] ss:$8 sps:$4 sm:$0xff]  }
 0x238   :  { %3009 = vmatpush1.bf16.msra.mxu0 %v4770_v23  ;;  %3173 = vmatpush1.bf16.msra.mxu1 %v4773_v24  ;;  %v4856_v23 = vld [vmem:[#allocation8 + $0xc4] ss:$8 sps:$4 sm:$0xff]   ;;  %v4854_v24 = vld [vmem:[#allocation8 + $0xc0] ss:$8 sps:$4 sm:$0xff]  }
 0x239   :  { %3010 = vmatprep.subr.bf16.mxu0 %v4778_v51  ;;  %3174 = vmatprep.subr.bf16.mxu1 %v4781_v26  ;;  %v4859_v51 = vld [vmem:[#allocation8 + $0xd4] ss:$8 sps:$4 sm:$0xff]   ;;  %v4857_v26 = vld [vmem:[#allocation8 + $0xd0] ss:$8 sps:$4 sm:$0xff]  }
 0x23c   :  { %3011 = vmatpush1.bf16.msra.mxu0 %v4776_v40  ;;  %3175 = vmatpush1.bf16.msra.mxu1 %v4779_v27  ;;  %v4862_v40 = vld [vmem:[#allocation8 + $0xe4] ss:$8 sps:$4 sm:$0xff]   ;;  %v4860_v27 = vld [vmem:[#allocation8 + $0xe0] ss:$8 sps:$4 sm:$0xff]  }
 0x23d   :  { %3012 = vmatprep.subr.bf16.mxu0 %v4784_v28  ;;  %3176 = vmatprep.subr.bf16.mxu1 %v4787_v29  ;;  %v4865_v28 = vld [vmem:[#allocation8 + $0xf4] ss:$8 sps:$4 sm:$0xff]   ;;  %v4863_v29 = vld [vmem:[#allocation8 + $0xf0] ss:$8 sps:$4 sm:$0xff]  }
 0x240   :  { %3013 = vmatpush1.bf16.msra.mxu0 %v4782_v30  ;;  %3177 = vmatpush1.bf16.msra.mxu1 %v4785_v33  ;;  %v4868_v30 = vld [vmem:[#allocation8 + $0x104] ss:$8 sps:$4 sm:$0xff]  }
 0x241   :  { %3014 = vmatprep.subr.bf16.mxu0 %v4790_v49  ;;  %3178 = vmatprep.subr.bf16.mxu1 %v4793_v34  ;;  %v4914_v33 = vld [vmem:[#allocation10 + $0x40] sm:$0xff]   ;;  %v4916_v34 = vld [vmem:[#allocation10 + $0x48] sm:$0xff]  }
 0x242   :  { %v4915_v49 = vld [vmem:[#allocation10] sm:$0xff]  }
 0x244   :  { %3015 = vmatpush1.bf16.msra.mxu0 %v4788_v35  ;;  %3179 = vmatpush1.bf16.msra.mxu1 %v4791_v37  ;;  %v4917_v35 = vld [vmem:[#allocation10 + $0x8] sm:$0xff]   ;;  %v4918_v37 = vld [vmem:[#allocation10 + $0x50] sm:$0xff]  }
 0x245   :  { %3016 = vmatprep.subr.bf16.mxu0 %v4796_v38  ;;  %3180 = vmatprep.subr.bf16.mxu1 %v4799_v41  ;;  %v4919_v38 = vld [vmem:[#allocation10 + $0x10] sm:$0xff]   ;;  %v4920_v41 = vld [vmem:[#allocation10 + $0x58] sm:$0xff]  }
 0x248   :  { %3017 = vmatpush1.bf16.msra.mxu0 %v4794_v42  ;;  %3181 = vmatpush1.bf16.msra.mxu1 %v4797_v43  ;;  %v4921_v42 = vld [vmem:[#allocation10 + $0x18] sm:$0xff]   ;;  %v4922_v43 = vld [vmem:[#allocation10 + $0x60] sm:$0xff]  }
 0x249   :  { %3018 = vmatprep.subr.bf16.mxu0 %v4802_v44  ;;  %3182 = vmatprep.subr.bf16.mxu1 %v4805_v45  ;;  %v4924_v44 = vld [vmem:[#allocation10 + $0x68] sm:$0xff]  }
 0x24a   :  { %v4925_v45 = vld [vmem:[#allocation10 + $0x28] sm:$0xff]  }
 0x24c   :  { %3019 = vmatpush1.bf16.msra.mxu0 %v4800_v46  ;;  %3183 = vmatpush1.bf16.msra.mxu1 %v4803_v47  ;;  %v5346_v46 = vld [vmem:[%s5386_s5] sm:$0xf] }
 0x24d   :  { %3020 = vmatprep.subr.bf16.mxu0 %v4808_v50  ;;  %3184 = vmatprep.subr.bf16.mxu1 %v4811_v55  ;;  %v1572_v47 = vrot.slane %v5346_v46, %v5304_v52  ;;  %v1576_v48 = vrot.slane %v5346_v46, %v5312_v54  ;;  %v1584_v50 = vrot.slane %v5346_v46, %v465_v1 }
 0x250   :  { %3021 = vmatpush1.bf16.msra.mxu0 %v4806_v56  ;;  %3185 = vmatpush1.bf16.msra.mxu1 %v4809_v57 }
 0x251   :  { %3022 = vmatprep.subr.bf16.mxu0 %v4814_v32  ;;  %3186 = vmatprep.subr.bf16.mxu1 %v4817_v58 }
 0x254   :  { %3023 = vmatpush1.bf16.msra.mxu0 %v4812_v59  ;;  %3187 = vmatpush1.bf16.msra.mxu1 %v4815_v60 }
 0x255   :  { %3601 = vmatprep.subr.bf16.mxu0 %v4820_v53  ;;  %4354 = vmatprep.subr.bf16.mxu1 %v4914_v33  ;;  %v1580_v33 = vrot.slane %v5346_v46, %v461_v62  ;;  %v4929_v62 = vld [vmem:[#allocation10 + $0x38] sm:$0xff]  }
 0x257   :  { %3025 = vmatmul.mubr.bf16.vlgmr.msra.gmra.mrb[4].mxu0 %v1309_v0  ;;  %3189 = vmatmul.mubr.bf16.vlgmr.msra.gmra.mrb[12].mxu1 %v1309_v0 }
 0x258   :  { %3602 = vmatpush1.bf16.msra.mxu0 %v4818_v63  ;;  %4355 = vmatpush3.bf16.msra.mxu1 %v4915_v49  ;;  %v4910_v49 = vld [vmem:[#allocation8 + $0x1e4] ss:$8 sps:$4 sm:$0xff]  }
 0x259   :  { %3603 = vmatprep.subr.bf16.mxu0 %v4823_v2  ;;  %4356 = vmatprep.subr.bf16.mxu1 %v4916_v34  ;;  %v4908_v34 = vld [vmem:[#allocation8 + $0x1e0] ss:$8 sps:$4 sm:$0xff]  }
 0x25c   :  { %3604 = vmatpush1.bf16.msra.mxu0 %v4821_v36  ;;  %4357 = vmatpush3.bf16.msra.mxu1 %v4917_v35 }
 0x25d   :  { %3605 = vmatprep.subr.bf16.mxu0 %v4826_v3  ;;  %4358 = vmatprep.subr.bf16.mxu1 %v4918_v37  ;;  %v4913_v37 = vld [vmem:[#allocation8 + $0x1f4] ss:$8 sps:$4 sm:$0xff]  }
 0x260   :  { %3606 = vmatpush1.bf16.msra.mxu0 %v4824_v4  ;;  %4359 = vmatpush3.bf16.msra.mxu1 %v4919_v38  ;;  %v4866_v4 = vld [vmem:[#allocation8 + $0x100] ss:$8 sps:$4 sm:$0xff]   ;;  %v4911_v38 = vld [vmem:[#allocation8 + $0x1f0] ss:$8 sps:$4 sm:$0xff]  }
 0x261   :  { %3607 = vmatprep.subr.bf16.mxu0 %v4829_v5  ;;  %4360 = vmatprep.subr.bf16.mxu1 %v4920_v41 }
 0x264   :  { %3608 = vmatpush1.bf16.msra.mxu0 %v4827_v7  ;;  %4361 = vmatpush3.bf16.msra.mxu1 %v4921_v42  ;;  %v4871_v7 = vld [vmem:[#allocation8 + $0x114] ss:$8 sps:$4 sm:$0xff]  }
 0x265   :  { %3609 = vmatprep.subr.bf16.mxu0 %v4832_v8  ;;  %4362 = vmatprep.subr.bf16.mxu1 %v4922_v43  ;;  %v4869_v8 = vld [vmem:[#allocation8 + $0x110] ss:$8 sps:$4 sm:$0xff]  }
 0x266   :  { %v4926_v43 = vld [vmem:[#allocation10 + $0x70] sm:$0xff]  }
 0x268   :  { %3610 = vmatpush1.bf16.msra.mxu0 %v4830_v9  ;;  %4363 = vmatpush3.bf16.msra.mxu1 %v4923_v39  ;;  %v4874_v9 = vld [vmem:[#allocation8 + $0x124] ss:$8 sps:$4 sm:$0xff]   ;;  %v4927_v39 = vld [vmem:[#allocation10 + $0x30] sm:$0xff]  }
 0x269   :  { %3611 = vmatprep.subr.bf16.mxu0 %v4835_v10  ;;  %4364 = vmatprep.subr.bf16.mxu1 %v4924_v44  ;;  %v4872_v10 = vld [vmem:[#allocation8 + $0x120] ss:$8 sps:$4 sm:$0xff]   ;;  %v3269_v44 = vld [vmem:[%s5388_s7] sm:$0x3]  ;;  %s5093_s7 = smov [#allocation11]  }
 0x26a   :  { %v3278_v46 = vrot.slane %v3269_v44, %v5312_v54  ;;  %s3869_s0 = sshll.u32 %s5093_s7, 4  ;;  %s3870_s0 = int_to_ptr.vmem [resolvable:$true] %s3869_s0 }
 0x26b   :  { %s5044_s20 = scalar_lea.vmem %s3870_s0, 128  ;;  %p5049_p13 = scmp.lt.s32.totalorder %s3870_s0, %s3870_s0 }
 0x26c   :  { %3612 = vmatpush1.bf16.msra.mxu0 %v4833_v11  ;;  %4365 = vmatpush3.bf16.msra.mxu1 %v4925_v45  ;;  %v4877_v11 = vld [vmem:[#allocation8 + $0x134] ss:$8 sps:$4 sm:$0xff]   ;;  %v3274_v45 = vrot.slane %v3269_v44, %v5304_v52  ;;  %p5045_p12 = scmp.ne.s32.totalorder %s3870_s0, %s5044_s20  ;;  %p5050_p0 = scmp.lt.s32.totalorder %s5044_s20, %s5044_s20 }
 0x26d   :  { %3613 = vmatprep.subr.bf16.mxu0 %v4838_v12  ;;  %v4875_v12 = vld [vmem:[#allocation8 + $0x130] ss:$8 sps:$4 sm:$0xff]   ;;  %4366 = vmatprep.subr.bf16.mxu1 %v4926_v43 }
 0x26e   :  { %p5051_p1 = por %p5050_p0, %p5049_p13 }
 0x270   :  { %3614 = vmatpush1.bf16.msra.mxu0 %v4836_v13  ;;  %v4880_v13 = vld [vmem:[#allocation8 + $0x144] ss:$8 sps:$4 sm:$0xff]   ;;  %4367 = vmatpush3.bf16.msra.mxu1 %v4927_v39  ;;  %p5052_p2 = pnand %p5051_p1, %p5045_p12 }
 0x271   :  { %3615 = vmatprep.subr.bf16.mxu0 %v4841_v14  ;;  %v4878_v14 = vld [vmem:[#allocation8 + $0x140] ss:$8 sps:$4 sm:$0xff]   ;;  %4368 = vmatprep.subr.bf16.mxu1 %v4928_v20 }
 0x274   :  { %3616 = vmatpush1.bf16.msra.mxu0 %v4839_v15  ;;  %v4883_v15 = vld [vmem:[#allocation8 + $0x154] ss:$8 sps:$4 sm:$0xff]   ;;  %4369 = vmatpush3.bf16.msra.mxu1 %v4929_v62 }
 0x275   :  { %3617 = vmatprep.subr.bf16.mxu0 %v4844_v16  ;;  %v4881_v16 = vld [vmem:[#allocation8 + $0x150] ss:$8 sps:$4 sm:$0xff]  }
 0x278   :  { %3618 = vmatpush1.bf16.msra.mxu0 %v4842_v17  ;;  %v4886_v17 = vld [vmem:[#allocation8 + $0x164] ss:$8 sps:$4 sm:$0xff]  }
 0x279   :  { %3619 = vmatprep.subr.bf16.mxu0 %v4847_v18  ;;  %v4884_v18 = vld [vmem:[#allocation8 + $0x160] ss:$8 sps:$4 sm:$0xff]  }
 0x27c   :  { %3620 = vmatpush1.bf16.msra.mxu0 %v4845_v25  ;;  %v4889_v25 = vld [vmem:[#allocation8 + $0x174] ss:$8 sps:$4 sm:$0xff]  }
 0x27d   :  { %3621 = vmatprep.subr.bf16.mxu0 %v4850_v19  ;;  %v4887_v19 = vld [vmem:[#allocation8 + $0x170] ss:$8 sps:$4 sm:$0xff]  }
 0x280   :  { %3622 = vmatpush1.bf16.msra.mxu0 %v4848_v21  ;;  %v4892_v21 = vld [vmem:[#allocation8 + $0x184] ss:$8 sps:$4 sm:$0xff]  }
 0x281   :  { %3623 = vmatprep.subr.bf16.mxu0 %v4853_v6  ;;  %v4890_v6 = vld [vmem:[#allocation8 + $0x180] ss:$8 sps:$4 sm:$0xff]  }
 0x284   :  { %3624 = vmatpush1.bf16.msra.mxu0 %v4851_v22  ;;  %v4895_v22 = vld [vmem:[#allocation8 + $0x194] ss:$8 sps:$4 sm:$0xff]  }
 0x285   :  { %3625 = vmatprep.subr.bf16.mxu0 %v4856_v23  ;;  %v4893_v23 = vld [vmem:[#allocation8 + $0x190] ss:$8 sps:$4 sm:$0xff]  }
 0x288   :  { %3626 = vmatpush1.bf16.msra.mxu0 %v4854_v24  ;;  %v4898_v24 = vld [vmem:[#allocation8 + $0x1a4] ss:$8 sps:$4 sm:$0xff]  }
 0x289   :  { %3627 = vmatprep.subr.bf16.mxu0 %v4859_v51  ;;  %v4896_v51 = vld [vmem:[#allocation8 + $0x1a0] ss:$8 sps:$4 sm:$0xff]  }
 0x28c   :  { %3628 = vmatpush1.bf16.msra.mxu0 %v4857_v26  ;;  %v4901_v26 = vld [vmem:[#allocation8 + $0x1b4] ss:$8 sps:$4 sm:$0xff]  }
 0x28d   :  { %3629 = vmatprep.subr.bf16.mxu0 %v4862_v40  ;;  %v4899_v40 = vld [vmem:[#allocation8 + $0x1b0] ss:$8 sps:$4 sm:$0xff]  }
 0x290   :  { %3630 = vmatpush1.bf16.msra.mxu0 %v4860_v27  ;;  %v4904_v27 = vld [vmem:[#allocation8 + $0x1c4] ss:$8 sps:$4 sm:$0xff]  }
 0x291   :  { %3631 = vmatprep.subr.bf16.mxu0 %v4865_v28  ;;  %v4902_v28 = vld [vmem:[#allocation8 + $0x1c0] ss:$8 sps:$4 sm:$0xff]  }
 0x294   :  { %3632 = vmatpush1.bf16.msra.mxu0 %v4863_v29  ;;  %v4907_v29 = vld [vmem:[#allocation8 + $0x1d4] ss:$8 sps:$4 sm:$0xff]  }
 0x295   :  { %3642 = vmatprep.subr.bf16.mxu0 %v4868_v30  ;;  %v4905_v30 = vld [vmem:[#allocation8 + $0x1d0] ss:$8 sps:$4 sm:$0xff]  }
 0x32a   :  { %v3026_v55 = vpop.f32.mrb[4].mxu0  ;;  %v5355_v56 = vpop.f32.mrb[12].mxu1 }
 0x32b   :  { %v4376_v57 = vadd.f32 %v3026_v55, %v1572_v47  ;;  %v3028_v31 = vpop.f32.mrb[5].mxu0  ;;  %v3192_v32 = vpop.f32.mrb[13].mxu1  ;;  %v4378_v35 = vadd.f32 %v5355_v56, %v1580_v33 }
 0x32c   :  { %v4377_v58 = vadd.f32 %v3028_v31, %v1576_v48  ;;  %v4379_v59 = vadd.f32 %v3192_v32, %v1584_v50  ;;  %v3030_v60 = vpop.f32.mrb[6].mxu0  ;;  %v3194_v61 = vpop.f32.mrb[14].mxu1 }
 0x32d   :  { %v3197_v53 = vmax.f32 %v4376_v57, 0.0  ;;  %v3031_v63 = vpop.f32.mrb[7].mxu0  ;;  %v3195_v0 = vpop.f32.mrb[15].mxu1  ;;  %v3199_v41 = vmax.f32 %v4378_v35, 0.0  ;;  %v4337_v61 = vld [vmem:[%s5390_s9] ss:$0 sm:$0xff] }
 0x32e   :  { %v3198_v2 = vmax.f32 %v4377_v58, 0.0  ;;  %v3200_v36 = vmax.f32 %v4379_v59, 0.0 }
 0x32f   :  { %v3201_v5 = vpack.c.bf16 %v3197_v53, %v3197_v53  ;;  %v3203_v42 = vpack.c.bf16 %v3199_v41, %v3199_v41 }
 0x330   :  { %v3202_v3 = vpack.c.bf16 %v3198_v2, %v3198_v2  ;;  %v3204_v1 = vpack.c.bf16 %v3200_v36, %v3200_v36 }
 0x332   :  { %3633 = vmatprep.mubr.bf16.mxu0 %v3202_v3 }
 0x333   :  { %3634 = vmatmul.mubr.bf16.vlgmr.msra.gmra.mrb[8].mxu0 %v3201_v5 }
 0x334   :  { %3643 = vmatpush1.bf16.msra.mxu0 %v4866_v4  ;;  %3674 = vmatprep.mubr.bf16.mxu0 %v3204_v1 }
 0x335   :  { %3644 = vmatprep.subr.bf16.mxu0 %v4871_v7 }
 0x338   :  { %3645 = vmatpush1.bf16.msra.mxu0 %v4869_v8 }
 0x339   :  { %3646 = vmatprep.subr.bf16.mxu0 %v4874_v9 }
 0x33c   :  { %3647 = vmatpush1.bf16.msra.mxu0 %v4872_v10 }
 0x33d   :  { %3648 = vmatprep.subr.bf16.mxu0 %v4877_v11 }
 0x340   :  { %3649 = vmatpush1.bf16.msra.mxu0 %v4875_v12 }
 0x341   :  { %3650 = vmatprep.subr.bf16.mxu0 %v4880_v13 }
 0x344   :  { %3651 = vmatpush1.bf16.msra.mxu0 %v4878_v14 }
 0x345   :  { %3652 = vmatprep.subr.bf16.mxu0 %v4883_v15 }
 0x348   :  { %3653 = vmatpush1.bf16.msra.mxu0 %v4881_v16 }
 0x349   :  { %3654 = vmatprep.subr.bf16.mxu0 %v4886_v17 }
 0x34c   :  { %3655 = vmatpush1.bf16.msra.mxu0 %v4884_v18 }
 0x34d   :  { %3656 = vmatprep.subr.bf16.mxu0 %v4889_v25 }
 0x350   :  { %3657 = vmatpush1.bf16.msra.mxu0 %v4887_v19 }
 0x351   :  { %3658 = vmatprep.subr.bf16.mxu0 %v4892_v21 }
 0x354   :  { %3659 = vmatpush1.bf16.msra.mxu0 %v4890_v6 }
 0x355   :  { %3660 = vmatprep.subr.bf16.mxu0 %v4895_v22 }
 0x358   :  { %3661 = vmatpush1.bf16.msra.mxu0 %v4893_v23 }
 0x359   :  { %3662 = vmatprep.subr.bf16.mxu0 %v4898_v24 }
 0x35c   :  { %3663 = vmatpush1.bf16.msra.mxu0 %v4896_v51 }
 0x35d   :  { %3664 = vmatprep.subr.bf16.mxu0 %v4901_v26 }
 0x360   :  { %3665 = vmatpush1.bf16.msra.mxu0 %v4899_v40 }
 0x361   :  { %3666 = vmatprep.subr.bf16.mxu0 %v4904_v27 }
 0x364   :  { %3667 = vmatpush1.bf16.msra.mxu0 %v4902_v28 }
 0x365   :  { %3668 = vmatprep.subr.bf16.mxu0 %v4907_v29 }
 0x368   :  { %3669 = vmatpush1.bf16.msra.mxu0 %v4905_v30 }
 0x369   :  { %3670 = vmatprep.subr.bf16.mxu0 %v4910_v49 }
 0x36c   :  { %3671 = vmatpush1.bf16.msra.mxu0 %v4908_v34 }
 0x36d   :  { %3672 = vmatprep.subr.bf16.mxu0 %v4913_v37 }
 0x370   :  { %3673 = vmatpush1.bf16.msra.mxu0 %v4911_v38 }
 0x373   :  { %3675 = vmatmul.mubr.bf16.vlgmr.msra.gmra.mrb[8].mxu0 %v3203_v42 }
 0x446   :  { %v3676_v47 = vpop.f32.mrb[8].mxu0 }
 0x447   :  { %v4380_v48 = vadd.f32 %v3676_v47, %v3274_v45  ;;  %v3678_v50 = vpop.f32.mrb[9].mxu0 }
 0x448   :  { %v4381_v55 = vadd.f32 %v3678_v50, %v3278_v46  ;;  %v3680_v56 = vpop.f32.mrb[10].mxu0 }
 0x449   :  { %v3683_v57 = vmax.f32 %v4380_v48, 0.0  ;;  %v3681_v31 = vpop.f32.mrb[11].mxu0 }
 0x44a   :  { %v3684_v32 = vmax.f32 %v4381_v55, 0.0 }
 0x44b   :  { %v3685_v59 = vpack.c.bf16 %v3683_v57, %v3683_v57 }
 0x44c   :  { %v3686_v58 = vpack.c.bf16 %v3684_v32, %v3684_v32 }
 0x44e   :  { %3854 = vmatprep.mubr.bf16.mxu1 %v3686_v58 }
 0x44f   :  { %3855 = vmatmul.mubr.bf16.vlgmr.msra.gmra.mrb[16].mxu1 %v3685_v59 }
 0x522   :  { %v4370_v60 = vpop.f32.mrb[16].mxu1 }
 0x523   :  { %v4371_v52 = vpop.f32.mrb[17].mxu1 }
 0x524   :  { %v4372_v54 = vadd.f32 %v4371_v52, %v4370_v60  ;;  %v4373_v53 = vpop.f32.mrb[18].mxu1 }
 0x525   :  { %v4374_v63 = vpop.f32.mrb[19].mxu1 }
 0x526   :  { %v3857_v0 = vadd.f32 %v4372_v54, %v4337_v61 }
 0x528   :  { %3862 = vst [vmem:[#allocation11] sm:$0xff] %v3857_v0 }
 0x529   :  { %5055 = shalt.err (!%p5052_p2)
}
 0x52a   :  { %s5056_s9 = scalar_lea.hbm %s5391_s10, 128 }
 0x52b   :  { %p5057_p3 = scmp.ne.s32.totalorder %s5391_s10, %s5056_s9  ;;  %p5060_p4 = scmp.lt.u32.totalorder %s5056_s9, %s5391_s10 }
 0x52d   :  { %p5062_p5 = pnand %p5060_p4, %p5057_p3 }
 0x52f   :  { %5065 = shalt.err (!%p5062_p5)
}
 0x530   :  { %3872 = dma.vmem_to_hbm [thread:$0]  %s3870_s0, 128, %s5391_s10, [#allocation4]  }
 0x531   :  { %5072 = dma.done.wait [#allocation4], 128  }
 0x532   :  { %5073 = vsyncadd [#allocation4], 4294967168 }
 0x533   :  { %3876 = vsyncpa [#allocation3], 1 }
 0x534   :  { %3877 = vsyncpa [#allocation6], 1 }
 0x535   :  { %3878 = vsyncpa [#allocation9], 1 }
 0x536   :  { %3879 = vsyncpa [#allocation4], 1 }

</bundles_post_ra>
